<compile_context>
chip_gen: v5e
topology: v5e:2x2
jax: 0.10.0
libtpu: 0.0.40
codegen_flags: <defaults>
</compile_context>

<pallas_src>
import functools

import jax
import jax.numpy as jnp
import numpy as np
from jax.experimental import pallas as pl
from jax.experimental.pallas import tpu as pltpu


def _layer_norm(x, gamma, beta, eps):
    # Two-pass statistics (centered variance) in f32 — robust to large means.
    mean = jnp.mean(x, axis=-1, keepdims=True)
    xc = x - mean
    var = jnp.mean(xc * xc, axis=-1, keepdims=True)
    return xc * jax.lax.rsqrt(var + eps) * gamma + beta


def spatial_attn_kernel(x_ref,
                        wqkv_ref, bqkv_ref,        # (D, 3D) bf16, (1, 3D) f32
                        wo_ref, bo_ref,            # (D, D)  bf16, (1, D)  f32
                        gamma_ref, beta_ref,       # (1, D) f32
                        w1_ref, b1_ref,            # (D, F) bf16, (1, F) f32
                        w2_ref, b2_ref,            # (F, D) bf16, (1, D) f32
                        o_ref,
                        *, heads, norm_eps, scale):
    TB, S, D = x_ref.shape
    dh = D // heads
    M = TB * S

    x = x_ref[...].reshape(M, D)                         # (M, D) f32
    xb = x.astype(jnp.bfloat16)

    # ---- fused Q/K/V projection: one full-width lane-dense MXU matmul -----------
    qkv = jnp.dot(xb, wqkv_ref[...],
                  preferred_element_type=jnp.float32) + bqkv_ref[...]   # (M, 3D) f32
    qkv3 = qkv.reshape(TB, S, 3 * D)

    # ---- per-(batch, head) attention --------------------------------------------
    # dh-wide score/ctx matmuls are inherent to small head_dim (second-order once the
    # projections / FF are full width).
    # TODO(synk): flash-style online softmax over a KV grid axis for large S.
    ctx_heads = []
    for h in range(heads):
        q_h = qkv3[:, :, h * dh:(h + 1) * dh].astype(jnp.bfloat16)          # (TB,S,dh)
        k_h = qkv3[:, :, D + h * dh:D + (h + 1) * dh].astype(jnp.bfloat16)
        v_h = qkv3[:, :, 2 * D + h * dh:2 * D + (h + 1) * dh].astype(jnp.bfloat16)

        s = jnp.einsum('bqd,bkd->bqk', q_h, k_h,
                       preferred_element_type=jnp.float32) * scale          # (TB,S,S) f32
        s = s - jnp.max(s, axis=-1, keepdims=True)
        e = jnp.exp(s)
        p = e / jnp.sum(e, axis=-1, keepdims=True)                          # exact divide

        ctx_h = jnp.einsum('bqk,bkd->bqd', p.astype(jnp.bfloat16), v_h,
                           preferred_element_type=jnp.float32)              # (TB,S,dh)
        ctx_heads.append(ctx_h.astype(jnp.bfloat16))

    # heads assembled along lanes -> single full-K output projection (cross-head
    # sum fused into the (M, D) @ (D, D) contraction).
    ctx = jnp.concatenate(ctx_heads, axis=-1).reshape(M, D)                 # (M, D) bf16
    attn_out = jnp.dot(ctx, wo_ref[...],
                       preferred_element_type=jnp.float32) + bo_ref[...]    # (M, D) f32

    gamma = gamma_ref[...]
    beta = beta_ref[...]

    # ---- residual + layer norm ----------------------------------------------------
    x1 = _layer_norm(x + attn_out, gamma, beta, norm_eps)

    # ---- feed forward (Linear -> ReLU -> Linear) -----------------------------------
    h1 = jnp.maximum(
        jnp.dot(x1.astype(jnp.bfloat16), w1_ref[...],
                preferred_element_type=jnp.float32) + b1_ref[...], 0.0)
    ff = jnp.dot(h1.astype(jnp.bfloat16), w2_ref[...],
                 preferred_element_type=jnp.float32) + b2_ref[...]

    # ---- residual + layer norm ----------------------------------------------------
    out = _layer_norm(x1 + ff, gamma, beta, norm_eps)
    o_ref[...] = out.reshape(TB, S, D).astype(o_ref.dtype)


def _pick_batch_tile(B, S, target_rows):
    # Smallest divisor of B such that TB*S rows fill the MXU M dimension; else all of B.
    for d in range(1, B + 1):
        if B % d == 0 and d * S >= target_rows:
            return d
    return B


def _vmem_limit_bytes():
    # Generation-aware scoped-VMEM limit (leave headroom below physical capacity):
    # ~100 MiB on 128-MiB parts (v5e/v6e), ~56 MiB on 64-MiB parts (v7x).
    cap = 64 * 1024 * 1024
    try:
        info = pltpu.get_tpu_info()
        cap = int(getattr(info, "vmem_capacity_bytes", cap))
    except Exception:
        pass
    return int(min(100 * 1024 * 1024, (cap * 7) // 8))


def spatial_attention_layer(x, params, heads, norm_eps=1e-6, target_rows=256):
    B, S, D = x.shape
    assert D % heads == 0
    dh = D // heads
    F = params['w1'].shape[-1]
    scale = 1.0 / float(np.sqrt(dh))

    # Fold batch into the matmul M dimension.  (On v7x, prefer B//TB to stay a multiple
    # of 2 so both TensorCores get work under dimension_semantics=("parallel",).)
    TB = _pick_batch_tile(B, S, target_rows)
    grid = (B // TB,)

    # Lane-dense fused QKV weights / biases, bf16 weights for half the DMA bytes.
    wqkv = jnp.concatenate([params['wq'], params['wk'], params['wv']],
                           axis=-1).astype(jnp.bfloat16)                    # (D, 3D)
    bqkv = jnp.concatenate([params['bq'], params['bk'], params['bv']],
                           axis=-1).astype(jnp.float32)                     # (1, 3D)
    wo = params['wo'].astype(jnp.bfloat16)                                  # (D, D)
    w1 = params['w1'].astype(jnp.bfloat16)                                  # (D, F)
    w2 = params['w2'].astype(jnp.bfloat16)                                  # (F, D)

    # Grid-constant blocks: single-buffer them (index_map never changes, so double
    # buffering only wastes VMEM — matters for production D/F on v7x).
    def const(shape):
        return pl.BlockSpec(shape, lambda b: (0,) * len(shape),
                            pipeline_mode=pl.Buffered(1))

    in_specs = [
        pl.BlockSpec((TB, S, D), lambda b: (b, 0, 0)),                      # x
        const((D, 3 * D)), const((1, 3 * D)),                               # wqkv, bqkv
        const((D, D)), const((1, D)),                                       # wo, bo
        const((1, D)), const((1, D)),                                       # gamma, beta
        const((D, F)), const((1, F)),                                       # w1, b1
        const((F, D)), const((1, D)),                                       # w2, b2
    ]

    kernel = functools.partial(spatial_attn_kernel, heads=heads,
                               norm_eps=norm_eps, scale=scale)
    return pl.pallas_call(
        kernel,
        out_shape=jax.ShapeDtypeStruct((B, S, D), x.dtype),
        grid_spec=pltpu.PrefetchScalarGridSpec(
            num_scalar_prefetch=0,
            grid=grid,
            in_specs=in_specs,
            out_specs=pl.BlockSpec((TB, S, D), lambda b: (b, 0, 0)),
        ),
        compiler_params=pltpu.CompilerParams(
            dimension_semantics=("parallel",),        # batch tiles split across TCs
            vmem_limit_bytes=_vmem_limit_bytes(),
        ),
    )(x, wqkv, bqkv, wo, params['bo'], params['gamma'], params['beta'],
      w1, params['b1'], w2, params['b2'])


def reference(x, p, heads, eps=1e-6):
    B, S, D = x.shape
    dh = D // heads

    def ln(y):
        mu = jnp.mean(y, axis=-1, keepdims=True)
        var = jnp.mean((y - mu) ** 2, axis=-1, keepdims=True)
        return (y - mu) / jnp.sqrt(var + eps) * p['gamma'] + p['beta']

    q = x @ p['wq'] + p['bq']
    k = x @ p['wk'] + p['bk']
    v = x @ p['wv'] + p['bv']
    q = q.reshape(B, S, heads, dh).transpose(0, 2, 1, 3)
    k = k.reshape(B, S, heads, dh).transpose(0, 2, 1, 3)
    v = v.reshape(B, S, heads, dh).transpose(0, 2, 1, 3)
    s = jnp.einsum('bhqd,bhkd->bhqk', q, k) / jnp.sqrt(jnp.float32(dh))
    a = jax.nn.softmax(s, axis=-1)
    o = jnp.einsum('bhqk,bhkd->bhqd', a, v).transpose(0, 2, 1, 3).reshape(B, S, D)
    attn = o @ p['wo'] + p['bo']
    x1 = ln(x + attn)
    ff = jnp.maximum(x1 @ p['w1'] + p['b1'], 0.0) @ p['w2'] + p['b2']
    return ln(x1 + ff)


if __name__ == "__main__":
    # Small but lane-dense shapes: d_model and ff_middle_dim are multiples of 128,
    # S a multiple of 8 so the (TB, S, D) <-> (TB*S, D) reshapes are layout-free.
    B, S, D, H, F = 2, 8, 128, 4, 256   # batch, seq, d_model, heads, ff_middle_dim

    key = jax.random.PRNGKey(0)
    ks = jax.random.split(key, 13)
    sc = 0.1
    params = {
        'wq': sc * jax.random.normal(ks[0], (D, D), jnp.float32),
        'bq': sc * jax.random.normal(ks[1], (1, D), jnp.float32),
        'wk': sc * jax.random.normal(ks[2], (D, D), jnp.float32),
        'bk': sc * jax.random.normal(ks[3], (1, D), jnp.float32),
        'wv': sc * jax.random.normal(ks[4], (D, D), jnp.float32),
        'bv': sc * jax.random.normal(ks[5], (1, D), jnp.float32),
        'wo': sc * jax.random.normal(ks[6], (D, D), jnp.float32),
        'bo': sc * jax.random.normal(ks[7], (1, D), jnp.float32),
        'gamma': jnp.ones((1, D), jnp.float32),
        'beta': jnp.zeros((1, D), jnp.float32),
        'w1': sc * jax.random.normal(ks[8], (D, F), jnp.float32),
        'b1': sc * jax.random.normal(ks[9], (1, F), jnp.float32),
        'w2': sc * jax.random.normal(ks[10], (F, D), jnp.float32),
        'b2': sc * jax.random.normal(ks[11], (1, D), jnp.float32),
    }
    x = jax.random.normal(ks[12], (B, S, D), jnp.float32)

    out = jax.block_until_ready(spatial_attention_layer(x, params, heads=H))
    ref = jax.block_until_ready(reference(x, params, H))

    # bf16 MXU inputs (f32 accumulation) bound the match to the pure-f32 reference;
    # exact softmax divide + two-pass LayerNorm allow a tighter tolerance than before.
    np.testing.assert_allclose(np.asarray(out), np.asarray(ref), rtol=2e-2, atol=2e-2)
    print("KERNEL_OK")
</pallas_src>

<mosaic_0001>
module attributes {stable_mosaic.version = 11 : i64} {
  func.func @spatial_attn_kernel(%arg0: i32, %arg1: memref<2x8x128xf32, #tpu.memory_space<vmem>>, %arg2: memref<128x384xbf16, #tpu.memory_space<vmem>>, %arg3: memref<1x384xf32, #tpu.memory_space<vmem>>, %arg4: memref<128x128xbf16, #tpu.memory_space<vmem>>, %arg5: memref<1x128xf32, #tpu.memory_space<vmem>>, %arg6: memref<1x128xf32, #tpu.memory_space<vmem>>, %arg7: memref<1x128xf32, #tpu.memory_space<vmem>>, %arg8: memref<128x256xbf16, #tpu.memory_space<vmem>>, %arg9: memref<1x256xf32, #tpu.memory_space<vmem>>, %arg10: memref<256x128xbf16, #tpu.memory_space<vmem>>, %arg11: memref<1x128xf32, #tpu.memory_space<vmem>>, %arg12: memref<2x8x128xf32, #tpu.memory_space<vmem>>) attributes {dimension_semantics = [#tpu.dimension_semantics<parallel>], iteration_bounds = array<i64: 1>, scalar_prefetch = 0 : i64, scratch_operands = 0 : i64, tpu.core_type = #tpu.core_type<tc>, window_params = [{transform_indices = @transform_0, window_bounds = array<i64: 2, 8, 128>}, {pipeline_mode = #tpu.pipeline_mode<synchronous>, transform_indices = @transform_1, window_bounds = array<i64: 128, 384>}, {pipeline_mode = #tpu.pipeline_mode<synchronous>, transform_indices = @transform_2, window_bounds = array<i64: 1, 384>}, {pipeline_mode = #tpu.pipeline_mode<synchronous>, transform_indices = @transform_3, window_bounds = array<i64: 128, 128>}, {pipeline_mode = #tpu.pipeline_mode<synchronous>, transform_indices = @transform_4, window_bounds = array<i64: 1, 128>}, {pipeline_mode = #tpu.pipeline_mode<synchronous>, transform_indices = @transform_5, window_bounds = array<i64: 1, 128>}, {pipeline_mode = #tpu.pipeline_mode<synchronous>, transform_indices = @transform_6, window_bounds = array<i64: 1, 128>}, {pipeline_mode = #tpu.pipeline_mode<synchronous>, transform_indices = @transform_7, window_bounds = array<i64: 128, 256>}, {pipeline_mode = #tpu.pipeline_mode<synchronous>, transform_indices = @transform_8, window_bounds = array<i64: 1, 256>}, {pipeline_mode = #tpu.pipeline_mode<synchronous>, transform_indices = @transform_9, window_bounds = array<i64: 256, 128>}, {pipeline_mode = #tpu.pipeline_mode<synchronous>, transform_indices = @transform_10, window_bounds = array<i64: 1, 128>}, {transform_indices = @transform_11, window_bounds = array<i64: 2, 8, 128>}]} {
    %c0 = arith.constant 0 : index
    %c0_0 = arith.constant 0 : index
    %c0_1 = arith.constant 0 : index
    %0 = vector.load %arg1[%c0, %c0_0, %c0_1] : memref<2x8x128xf32, #tpu.memory_space<vmem>>, vector<2x8x128xf32>
    %1 = vector.shape_cast %0 : vector<2x8x128xf32> to vector<16x128xf32>
    %2 = arith.truncf %1 : vector<16x128xf32> to vector<16x128xbf16>
    %c0_2 = arith.constant 0 : index
    %c0_3 = arith.constant 0 : index
    %3 = vector.load %arg2[%c0_2, %c0_3] : memref<128x384xbf16, #tpu.memory_space<vmem>>, vector<128x384xbf16>
    %cst = arith.constant dense<0.000000e+00> : vector<16x384xf32>
    %4 = tpu.matmul %2, %3, %cst {dimension_numbers = #tpu.dot_dimension_numbers<[1], [0], [0], [1], [0, 0, 1, 1], [], []>} : vector<16x128xbf16>, vector<128x384xbf16>, vector<16x384xf32> -> vector<16x384xf32>
    %c0_4 = arith.constant 0 : index
    %c0_5 = arith.constant 0 : index
    %5 = vector.load %arg3[%c0_4, %c0_5] : memref<1x384xf32, #tpu.memory_space<vmem>>, vector<1x384xf32>
    %6 = vector.broadcast %5 : vector<1x384xf32> to vector<16x384xf32>
    %7 = arith.addf %4, %6 : vector<16x384xf32>
    %8 = vector.shape_cast %7 : vector<16x384xf32> to vector<2x8x384xf32>
    %9 = vector.extract_strided_slice %8 {offsets = [0, 0, 0], sizes = [2, 8, 32], strides = [1, 1, 1]} : vector<2x8x384xf32> to vector<2x8x32xf32>
    %10 = arith.truncf %9 : vector<2x8x32xf32> to vector<2x8x32xbf16>
    %11 = vector.extract_strided_slice %8 {offsets = [0, 0, 128], sizes = [2, 8, 32], strides = [1, 1, 1]} : vector<2x8x384xf32> to vector<2x8x32xf32>
    %12 = arith.truncf %11 : vector<2x8x32xf32> to vector<2x8x32xbf16>
    %13 = vector.extract_strided_slice %8 {offsets = [0, 0, 256], sizes = [2, 8, 32], strides = [1, 1, 1]} : vector<2x8x384xf32> to vector<2x8x32xf32>
    %14 = arith.truncf %13 : vector<2x8x32xf32> to vector<2x8x32xbf16>
    "tpu.trace_start"() <{level = 10 : i32, message = "bqd,bkd->bqk"}> : () -> ()
    %cst_6 = arith.constant dense<0.000000e+00> : vector<2x8x8xf32>
    %15 = tpu.matmul %10, %12, %cst_6 {dimension_numbers = #tpu.dot_dimension_numbers<[2], [2], [1], [1], [0, 0, 0, 1, 1, 1], [0], [0]>} : vector<2x8x32xbf16>, vector<2x8x32xbf16>, vector<2x8x8xf32> -> vector<2x8x8xf32>
    "tpu.trace_stop"() : () -> ()
    %cst_7 = arith.constant 0.176776692 : f32
    %16 = vector.broadcast %cst_7 : f32 to vector<2x8x8xf32>
    %17 = arith.mulf %15, %16 : vector<2x8x8xf32>
    %cst_8 = arith.constant dense<0xFF800000> : vector<2x8xf32>
    %18 = vector.multi_reduction <maximumf>, %17, %cst_8 [2] : vector<2x8x8xf32> to vector<2x8xf32>
    %19 = vector.shape_cast %18 : vector<2x8xf32> to vector<2x8x1xf32>
    %20 = vector.broadcast %19 : vector<2x8x1xf32> to vector<2x8x8xf32>
    %21 = arith.subf %17, %20 : vector<2x8x8xf32>
    %22 = math.exp %21 : vector<2x8x8xf32>
    %cst_9 = arith.constant dense<0.000000e+00> : vector<2x8xf32>
    %23 = vector.multi_reduction <add>, %22, %cst_9 [2] : vector<2x8x8xf32> to vector<2x8xf32>
    %24 = vector.shape_cast %23 : vector<2x8xf32> to vector<2x8x1xf32>
    %25 = vector.broadcast %24 : vector<2x8x1xf32> to vector<2x8x8xf32>
    %26 = arith.divf %22, %25 : vector<2x8x8xf32>
    %27 = arith.truncf %26 : vector<2x8x8xf32> to vector<2x8x8xbf16>
    "tpu.trace_start"() <{level = 10 : i32, message = "bqk,bkd->bqd"}> : () -> ()
    %cst_10 = arith.constant dense<0.000000e+00> : vector<2x8x32xf32>
    %28 = tpu.matmul %27, %14, %cst_10 {dimension_numbers = #tpu.dot_dimension_numbers<[2], [1], [1], [2], [0, 0, 0, 1, 1, 2], [0], [0]>} : vector<2x8x8xbf16>, vector<2x8x32xbf16>, vector<2x8x32xf32> -> vector<2x8x32xf32>
    "tpu.trace_stop"() : () -> ()
    %29 = arith.truncf %28 : vector<2x8x32xf32> to vector<2x8x32xbf16>
    %30 = vector.extract_strided_slice %8 {offsets = [0, 0, 32], sizes = [2, 8, 32], strides = [1, 1, 1]} : vector<2x8x384xf32> to vector<2x8x32xf32>
    %31 = arith.truncf %30 : vector<2x8x32xf32> to vector<2x8x32xbf16>
    %32 = vector.extract_strided_slice %8 {offsets = [0, 0, 160], sizes = [2, 8, 32], strides = [1, 1, 1]} : vector<2x8x384xf32> to vector<2x8x32xf32>
    %33 = arith.truncf %32 : vector<2x8x32xf32> to vector<2x8x32xbf16>
    %34 = vector.extract_strided_slice %8 {offsets = [0, 0, 288], sizes = [2, 8, 32], strides = [1, 1, 1]} : vector<2x8x384xf32> to vector<2x8x32xf32>
    %35 = arith.truncf %34 : vector<2x8x32xf32> to vector<2x8x32xbf16>
    "tpu.trace_start"() <{level = 10 : i32, message = "bqd,bkd->bqk"}> : () -> ()
    %cst_11 = arith.constant dense<0.000000e+00> : vector<2x8x8xf32>
    %36 = tpu.matmul %31, %33, %cst_11 {dimension_numbers = #tpu.dot_dimension_numbers<[2], [2], [1], [1], [0, 0, 0, 1, 1, 1], [0], [0]>} : vector<2x8x32xbf16>, vector<2x8x32xbf16>, vector<2x8x8xf32> -> vector<2x8x8xf32>
    "tpu.trace_stop"() : () -> ()
    %cst_12 = arith.constant 0.176776692 : f32
    %37 = vector.broadcast %cst_12 : f32 to vector<2x8x8xf32>
    %38 = arith.mulf %36, %37 : vector<2x8x8xf32>
    %cst_13 = arith.constant dense<0xFF800000> : vector<2x8xf32>
    %39 = vector.multi_reduction <maximumf>, %38, %cst_13 [2] : vector<2x8x8xf32> to vector<2x8xf32>
    %40 = vector.shape_cast %39 : vector<2x8xf32> to vector<2x8x1xf32>
    %41 = vector.broadcast %40 : vector<2x8x1xf32> to vector<2x8x8xf32>
    %42 = arith.subf %38, %41 : vector<2x8x8xf32>
    %43 = math.exp %42 : vector<2x8x8xf32>
    %cst_14 = arith.constant dense<0.000000e+00> : vector<2x8xf32>
    %44 = vector.multi_reduction <add>, %43, %cst_14 [2] : vector<2x8x8xf32> to vector<2x8xf32>
    %45 = vector.shape_cast %44 : vector<2x8xf32> to vector<2x8x1xf32>
    %46 = vector.broadcast %45 : vector<2x8x1xf32> to vector<2x8x8xf32>
    %47 = arith.divf %43, %46 : vector<2x8x8xf32>
    %48 = arith.truncf %47 : vector<2x8x8xf32> to vector<2x8x8xbf16>
    "tpu.trace_start"() <{level = 10 : i32, message = "bqk,bkd->bqd"}> : () -> ()
    %cst_15 = arith.constant dense<0.000000e+00> : vector<2x8x32xf32>
    %49 = tpu.matmul %48, %35, %cst_15 {dimension_numbers = #tpu.dot_dimension_numbers<[2], [1], [1], [2], [0, 0, 0, 1, 1, 2], [0], [0]>} : vector<2x8x8xbf16>, vector<2x8x32xbf16>, vector<2x8x32xf32> -> vector<2x8x32xf32>
    "tpu.trace_stop"() : () -> ()
    %50 = arith.truncf %49 : vector<2x8x32xf32> to vector<2x8x32xbf16>
    %51 = vector.extract_strided_slice %8 {offsets = [0, 0, 64], sizes = [2, 8, 32], strides = [1, 1, 1]} : vector<2x8x384xf32> to vector<2x8x32xf32>
    %52 = arith.truncf %51 : vector<2x8x32xf32> to vector<2x8x32xbf16>
    %53 = vector.extract_strided_slice %8 {offsets = [0, 0, 192], sizes = [2, 8, 32], strides = [1, 1, 1]} : vector<2x8x384xf32> to vector<2x8x32xf32>
    %54 = arith.truncf %53 : vector<2x8x32xf32> to vector<2x8x32xbf16>
    %55 = vector.extract_strided_slice %8 {offsets = [0, 0, 320], sizes = [2, 8, 32], strides = [1, 1, 1]} : vector<2x8x384xf32> to vector<2x8x32xf32>
    %56 = arith.truncf %55 : vector<2x8x32xf32> to vector<2x8x32xbf16>
    "tpu.trace_start"() <{level = 10 : i32, message = "bqd,bkd->bqk"}> : () -> ()
    %cst_16 = arith.constant dense<0.000000e+00> : vector<2x8x8xf32>
    %57 = tpu.matmul %52, %54, %cst_16 {dimension_numbers = #tpu.dot_dimension_numbers<[2], [2], [1], [1], [0, 0, 0, 1, 1, 1], [0], [0]>} : vector<2x8x32xbf16>, vector<2x8x32xbf16>, vector<2x8x8xf32> -> vector<2x8x8xf32>
    "tpu.trace_stop"() : () -> ()
    %cst_17 = arith.constant 0.176776692 : f32
    %58 = vector.broadcast %cst_17 : f32 to vector<2x8x8xf32>
    %59 = arith.mulf %57, %58 : vector<2x8x8xf32>
    %cst_18 = arith.constant dense<0xFF800000> : vector<2x8xf32>
    %60 = vector.multi_reduction <maximumf>, %59, %cst_18 [2] : vector<2x8x8xf32> to vector<2x8xf32>
    %61 = vector.shape_cast %60 : vector<2x8xf32> to vector<2x8x1xf32>
    %62 = vector.broadcast %61 : vector<2x8x1xf32> to vector<2x8x8xf32>
    %63 = arith.subf %59, %62 : vector<2x8x8xf32>
    %64 = math.exp %63 : vector<2x8x8xf32>
    %cst_19 = arith.constant dense<0.000000e+00> : vector<2x8xf32>
    %65 = vector.multi_reduction <add>, %64, %cst_19 [2] : vector<2x8x8xf32> to vector<2x8xf32>
    %66 = vector.shape_cast %65 : vector<2x8xf32> to vector<2x8x1xf32>
    %67 = vector.broadcast %66 : vector<2x8x1xf32> to vector<2x8x8xf32>
    %68 = arith.divf %64, %67 : vector<2x8x8xf32>
    %69 = arith.truncf %68 : vector<2x8x8xf32> to vector<2x8x8xbf16>
    "tpu.trace_start"() <{level = 10 : i32, message = "bqk,bkd->bqd"}> : () -> ()
    %cst_20 = arith.constant dense<0.000000e+00> : vector<2x8x32xf32>
    %70 = tpu.matmul %69, %56, %cst_20 {dimension_numbers = #tpu.dot_dimension_numbers<[2], [1], [1], [2], [0, 0, 0, 1, 1, 2], [0], [0]>} : vector<2x8x8xbf16>, vector<2x8x32xbf16>, vector<2x8x32xf32> -> vector<2x8x32xf32>
    "tpu.trace_stop"() : () -> ()
    %71 = arith.truncf %70 : vector<2x8x32xf32> to vector<2x8x32xbf16>
    %72 = vector.extract_strided_slice %8 {offsets = [0, 0, 96], sizes = [2, 8, 32], strides = [1, 1, 1]} : vector<2x8x384xf32> to vector<2x8x32xf32>
    %73 = arith.truncf %72 : vector<2x8x32xf32> to vector<2x8x32xbf16>
    %74 = vector.extract_strided_slice %8 {offsets = [0, 0, 224], sizes = [2, 8, 32], strides = [1, 1, 1]} : vector<2x8x384xf32> to vector<2x8x32xf32>
    %75 = arith.truncf %74 : vector<2x8x32xf32> to vector<2x8x32xbf16>
    %76 = vector.extract_strided_slice %8 {offsets = [0, 0, 352], sizes = [2, 8, 32], strides = [1, 1, 1]} : vector<2x8x384xf32> to vector<2x8x32xf32>
    %77 = arith.truncf %76 : vector<2x8x32xf32> to vector<2x8x32xbf16>
    "tpu.trace_start"() <{level = 10 : i32, message = "bqd,bkd->bqk"}> : () -> ()
    %cst_21 = arith.constant dense<0.000000e+00> : vector<2x8x8xf32>
    %78 = tpu.matmul %73, %75, %cst_21 {dimension_numbers = #tpu.dot_dimension_numbers<[2], [2], [1], [1], [0, 0, 0, 1, 1, 1], [0], [0]>} : vector<2x8x32xbf16>, vector<2x8x32xbf16>, vector<2x8x8xf32> -> vector<2x8x8xf32>
    "tpu.trace_stop"() : () -> ()
    %cst_22 = arith.constant 0.176776692 : f32
    %79 = vector.broadcast %cst_22 : f32 to vector<2x8x8xf32>
    %80 = arith.mulf %78, %79 : vector<2x8x8xf32>
    %cst_23 = arith.constant dense<0xFF800000> : vector<2x8xf32>
    %81 = vector.multi_reduction <maximumf>, %80, %cst_23 [2] : vector<2x8x8xf32> to vector<2x8xf32>
    %82 = vector.shape_cast %81 : vector<2x8xf32> to vector<2x8x1xf32>
    %83 = vector.broadcast %82 : vector<2x8x1xf32> to vector<2x8x8xf32>
    %84 = arith.subf %80, %83 : vector<2x8x8xf32>
    %85 = math.exp %84 : vector<2x8x8xf32>
    %cst_24 = arith.constant dense<0.000000e+00> : vector<2x8xf32>
    %86 = vector.multi_reduction <add>, %85, %cst_24 [2] : vector<2x8x8xf32> to vector<2x8xf32>
    %87 = vector.shape_cast %86 : vector<2x8xf32> to vector<2x8x1xf32>
    %88 = vector.broadcast %87 : vector<2x8x1xf32> to vector<2x8x8xf32>
    %89 = arith.divf %85, %88 : vector<2x8x8xf32>
    %90 = arith.truncf %89 : vector<2x8x8xf32> to vector<2x8x8xbf16>
    "tpu.trace_start"() <{level = 10 : i32, message = "bqk,bkd->bqd"}> : () -> ()
    %cst_25 = arith.constant dense<0.000000e+00> : vector<2x8x32xf32>
    %91 = tpu.matmul %90, %77, %cst_25 {dimension_numbers = #tpu.dot_dimension_numbers<[2], [1], [1], [2], [0, 0, 0, 1, 1, 2], [0], [0]>} : vector<2x8x8xbf16>, vector<2x8x32xbf16>, vector<2x8x32xf32> -> vector<2x8x32xf32>
    "tpu.trace_stop"() : () -> ()
    %92 = arith.truncf %91 : vector<2x8x32xf32> to vector<2x8x32xbf16>
    %93 = tpu.concatenate %29, %50, %71, %92 in 2 : vector<2x8x32xbf16>, vector<2x8x32xbf16>, vector<2x8x32xbf16>, vector<2x8x32xbf16> -> vector<2x8x128xbf16>
    %94 = vector.shape_cast %93 : vector<2x8x128xbf16> to vector<16x128xbf16>
    %c0_26 = arith.constant 0 : index
    %c0_27 = arith.constant 0 : index
    %95 = vector.load %arg4[%c0_26, %c0_27] : memref<128x128xbf16, #tpu.memory_space<vmem>>, vector<128x128xbf16>
    %cst_28 = arith.constant dense<0.000000e+00> : vector<16x128xf32>
    %96 = tpu.matmul %94, %95, %cst_28 {dimension_numbers = #tpu.dot_dimension_numbers<[1], [0], [0], [1], [0, 0, 1, 1], [], []>} : vector<16x128xbf16>, vector<128x128xbf16>, vector<16x128xf32> -> vector<16x128xf32>
    %c0_29 = arith.constant 0 : index
    %c0_30 = arith.constant 0 : index
    %97 = vector.load %arg5[%c0_29, %c0_30] : memref<1x128xf32, #tpu.memory_space<vmem>>, vector<1x128xf32>
    %98 = vector.broadcast %97 : vector<1x128xf32> to vector<16x128xf32>
    %99 = arith.addf %96, %98 : vector<16x128xf32>
    %c0_31 = arith.constant 0 : index
    %c0_32 = arith.constant 0 : index
    %100 = vector.load %arg6[%c0_31, %c0_32] : memref<1x128xf32, #tpu.memory_space<vmem>>, vector<1x128xf32>
    %c0_33 = arith.constant 0 : index
    %c0_34 = arith.constant 0 : index
    %101 = vector.load %arg7[%c0_33, %c0_34] : memref<1x128xf32, #tpu.memory_space<vmem>>, vector<1x128xf32>
    %102 = arith.addf %1, %99 : vector<16x128xf32>
    %cst_35 = arith.constant dense<0.000000e+00> : vector<16xf32>
    %103 = vector.multi_reduction <add>, %102, %cst_35 [1] : vector<16x128xf32> to vector<16xf32>
    %104 = vector.shape_cast %103 : vector<16xf32> to vector<16x1xf32>
    %cst_36 = arith.constant 1.280000e+02 : f32
    %105 = vector.broadcast %cst_36 : f32 to vector<16x1xf32>
    %106 = arith.divf %104, %105 : vector<16x1xf32>
    %107 = vector.broadcast %106 : vector<16x1xf32> to vector<16x128xf32>
    %108 = arith.subf %102, %107 : vector<16x128xf32>
    %109 = arith.mulf %108, %108 : vector<16x128xf32>
    %cst_37 = arith.constant dense<0.000000e+00> : vector<16xf32>
    %110 = vector.multi_reduction <add>, %109, %cst_37 [1] : vector<16x128xf32> to vector<16xf32>
    %111 = vector.shape_cast %110 : vector<16xf32> to vector<16x1xf32>
    %cst_38 = arith.constant 1.280000e+02 : f32
    %112 = vector.broadcast %cst_38 : f32 to vector<16x1xf32>
    %113 = arith.divf %111, %112 : vector<16x1xf32>
    %cst_39 = arith.constant 9.99999997E-7 : f32
    %114 = vector.broadcast %cst_39 : f32 to vector<16x1xf32>
    %115 = arith.addf %113, %114 : vector<16x1xf32>
    %116 = math.rsqrt %115 : vector<16x1xf32>
    %117 = vector.broadcast %116 : vector<16x1xf32> to vector<16x128xf32>
    %118 = arith.mulf %108, %117 : vector<16x128xf32>
    %119 = vector.broadcast %100 : vector<1x128xf32> to vector<16x128xf32>
    %120 = arith.mulf %118, %119 : vector<16x128xf32>
    %121 = vector.broadcast %101 : vector<1x128xf32> to vector<16x128xf32>
    %122 = arith.addf %120, %121 : vector<16x128xf32>
    %123 = arith.truncf %122 : vector<16x128xf32> to vector<16x128xbf16>
    %c0_40 = arith.constant 0 : index
    %c0_41 = arith.constant 0 : index
    %124 = vector.load %arg8[%c0_40, %c0_41] : memref<128x256xbf16, #tpu.memory_space<vmem>>, vector<128x256xbf16>
    %cst_42 = arith.constant dense<0.000000e+00> : vector<16x256xf32>
    %125 = tpu.matmul %123, %124, %cst_42 {dimension_numbers = #tpu.dot_dimension_numbers<[1], [0], [0], [1], [0, 0, 1, 1], [], []>} : vector<16x128xbf16>, vector<128x256xbf16>, vector<16x256xf32> -> vector<16x256xf32>
    %c0_43 = arith.constant 0 : index
    %c0_44 = arith.constant 0 : index
    %126 = vector.load %arg9[%c0_43, %c0_44] : memref<1x256xf32, #tpu.memory_space<vmem>>, vector<1x256xf32>
    %127 = vector.broadcast %126 : vector<1x256xf32> to vector<16x256xf32>
    %128 = arith.addf %125, %127 : vector<16x256xf32>
    %cst_45 = arith.constant 0.000000e+00 : f32
    %129 = vector.broadcast %cst_45 : f32 to vector<16x256xf32>
    %130 = arith.maximumf %128, %129 : vector<16x256xf32>
    %131 = arith.truncf %130 : vector<16x256xf32> to vector<16x256xbf16>
    %c0_46 = arith.constant 0 : index
    %c0_47 = arith.constant 0 : index
    %132 = vector.load %arg10[%c0_46, %c0_47] : memref<256x128xbf16, #tpu.memory_space<vmem>>, vector<256x128xbf16>
    %cst_48 = arith.constant dense<0.000000e+00> : vector<16x128xf32>
    %133 = tpu.matmul %131, %132, %cst_48 {dimension_numbers = #tpu.dot_dimension_numbers<[1], [0], [0], [1], [0, 0, 1, 1], [], []>} : vector<16x256xbf16>, vector<256x128xbf16>, vector<16x128xf32> -> vector<16x128xf32>
    %c0_49 = arith.constant 0 : index
    %c0_50 = arith.constant 0 : index
    %134 = vector.load %arg11[%c0_49, %c0_50] : memref<1x128xf32, #tpu.memory_space<vmem>>, vector<1x128xf32>
    %135 = vector.broadcast %134 : vector<1x128xf32> to vector<16x128xf32>
    %136 = arith.addf %133, %135 : vector<16x128xf32>
    %137 = arith.addf %122, %136 : vector<16x128xf32>
    %cst_51 = arith.constant dense<0.000000e+00> : vector<16xf32>
    %138 = vector.multi_reduction <add>, %137, %cst_51 [1] : vector<16x128xf32> to vector<16xf32>
    %139 = vector.shape_cast %138 : vector<16xf32> to vector<16x1xf32>
    %cst_52 = arith.constant 1.280000e+02 : f32
    %140 = vector.broadcast %cst_52 : f32 to vector<16x1xf32>
    %141 = arith.divf %139, %140 : vector<16x1xf32>
    %142 = vector.broadcast %141 : vector<16x1xf32> to vector<16x128xf32>
    %143 = arith.subf %137, %142 : vector<16x128xf32>
    %144 = arith.mulf %143, %143 : vector<16x128xf32>
    %cst_53 = arith.constant dense<0.000000e+00> : vector<16xf32>
    %145 = vector.multi_reduction <add>, %144, %cst_53 [1] : vector<16x128xf32> to vector<16xf32>
    %146 = vector.shape_cast %145 : vector<16xf32> to vector<16x1xf32>
    %cst_54 = arith.constant 1.280000e+02 : f32
    %147 = vector.broadcast %cst_54 : f32 to vector<16x1xf32>
    %148 = arith.divf %146, %147 : vector<16x1xf32>
    %cst_55 = arith.constant 9.99999997E-7 : f32
    %149 = vector.broadcast %cst_55 : f32 to vector<16x1xf32>
    %150 = arith.addf %148, %149 : vector<16x1xf32>
    %151 = math.rsqrt %150 : vector<16x1xf32>
    %152 = vector.broadcast %151 : vector<16x1xf32> to vector<16x128xf32>
    %153 = arith.mulf %143, %152 : vector<16x128xf32>
    %154 = vector.broadcast %100 : vector<1x128xf32> to vector<16x128xf32>
    %155 = arith.mulf %153, %154 : vector<16x128xf32>
    %156 = vector.broadcast %101 : vector<1x128xf32> to vector<16x128xf32>
    %157 = arith.addf %155, %156 : vector<16x128xf32>
    %158 = vector.shape_cast %157 : vector<16x128xf32> to vector<2x8x128xf32>
    %c0_56 = arith.constant 0 : index
    %c0_57 = arith.constant 0 : index
    %c0_58 = arith.constant 0 : index
    %159 = vector.load %arg12[%c0_56, %c0_57, %c0_58] : memref<2x8x128xf32, #tpu.memory_space<vmem>>, vector<2x8x128xf32>
    tpu.vector_store %arg12[%c0_56, %c0_57, %c0_58], %158 {strides = array<i32>} : memref<2x8x128xf32, #tpu.memory_space<vmem>>, vector<2x8x128xf32>,
    return
  }
  func.func @transform_0(%arg0: i32) -> (i32, i32, i32) {
    %c0_i32 = arith.constant 0 : i32
    %c0_i32_0 = arith.constant 0 : i32
    %c0_i32_1 = arith.constant 0 : i32
    return %arg0, %c0_i32, %c0_i32_0 : i32, i32, i32
  }
  func.func @transform_1(%arg0: i32) -> (i32, i32) {
    %c0_i32 = arith.constant 0 : i32
    %c0_i32_0 = arith.constant 0 : i32
    %c0_i32_1 = arith.constant 0 : i32
    return %c0_i32, %c0_i32_0 : i32, i32
  }
  func.func @transform_2(%arg0: i32) -> (i32, i32) {
    %c0_i32 = arith.constant 0 : i32
    %c0_i32_0 = arith.constant 0 : i32
    %c0_i32_1 = arith.constant 0 : i32
    return %c0_i32, %c0_i32_0 : i32, i32
  }
  func.func @transform_3(%arg0: i32) -> (i32, i32) {
    %c0_i32 = arith.constant 0 : i32
    %c0_i32_0 = arith.constant 0 : i32
    %c0_i32_1 = arith.constant 0 : i32
    return %c0_i32, %c0_i32_0 : i32, i32
  }
  func.func @transform_4(%arg0: i32) -> (i32, i32) {
    %c0_i32 = arith.constant 0 : i32
    %c0_i32_0 = arith.constant 0 : i32
    %c0_i32_1 = arith.constant 0 : i32
    return %c0_i32, %c0_i32_0 : i32, i32
  }
  func.func @transform_5(%arg0: i32) -> (i32, i32) {
    %c0_i32 = arith.constant 0 : i32
    %c0_i32_0 = arith.constant 0 : i32
    %c0_i32_1 = arith.constant 0 : i32
    return %c0_i32, %c0_i32_0 : i32, i32
  }
  func.func @transform_6(%arg0: i32) -> (i32, i32) {
    %c0_i32 = arith.constant 0 : i32
    %c0_i32_0 = arith.constant 0 : i32
    %c0_i32_1 = arith.constant 0 : i32
    return %c0_i32, %c0_i32_0 : i32, i32
  }
  func.func @transform_7(%arg0: i32) -> (i32, i32) {
    %c0_i32 = arith.constant 0 : i32
    %c0_i32_0 = arith.constant 0 : i32
    %c0_i32_1 = arith.constant 0 : i32
    return %c0_i32, %c0_i32_0 : i32, i32
  }
  func.func @transform_8(%arg0: i32) -> (i32, i32) {
    %c0_i32 = arith.constant 0 : i32
    %c0_i32_0 = arith.constant 0 : i32
    %c0_i32_1 = arith.constant 0 : i32
    return %c0_i32, %c0_i32_0 : i32, i32
  }
  func.func @transform_9(%arg0: i32) -> (i32, i32) {
    %c0_i32 = arith.constant 0 : i32
    %c0_i32_0 = arith.constant 0 : i32
    %c0_i32_1 = arith.constant 0 : i32
    return %c0_i32, %c0_i32_0 : i32, i32
  }
  func.func @transform_10(%arg0: i32) -> (i32, i32) {
    %c0_i32 = arith.constant 0 : i32
    %c0_i32_0 = arith.constant 0 : i32
    %c0_i32_1 = arith.constant 0 : i32
    return %c0_i32, %c0_i32_0 : i32, i32
  }
  func.func @transform_11(%arg0: i32) -> (i32, i32, i32) {
    %c0_i32 = arith.constant 0 : i32
    %c0_i32_0 = arith.constant 0 : i32
    %c0_i32_1 = arith.constant 0 : i32
    return %arg0, %c0_i32, %c0_i32_0 : i32, i32, i32
  }
}

</mosaic_0001>

<bundles_post_ra>
// kernel: tpu_custom_call.1
= control target key start
LH: loop header
LB: loop body
LE: loop exit
PB: predicated region body
PF: predicated region fallthrough
CT: control target
= control target key end

     0   :  { %16 = vsyncpa [#allocation3], 0  ;;  %s2378_s0 = inlined_call_operand.hbm [shape: f32[2,8,128], index: 0, kind: input, shape index: {}]   ;;  %s2379_s1 = inlined_call_operand.hbm [shape: bf16[128,384], index: 1, kind: input, shape index: {}]   ;;  %s2380_s2 = inlined_call_operand.hbm [shape: f32[1,384], index: 2, kind: input, shape index: {}]   ;;  %s2381_s3 = inlined_call_operand.hbm [shape: bf16[128,128], index: 3, kind: input, shape index: {}]   ;;  %s2382_s4 = inlined_call_operand.vmem [shape: f32[1,128], index: 4, kind: input, shape index: {}]   ;;  %s2383_s5 = inlined_call_operand.vmem [shape: f32[1,128], index: 5, kind: input, shape index: {}]   ;;  %s2384_s6 = inlined_call_operand.vmem [shape: f32[1,128], index: 6, kind: input, shape index: {}]   ;;  %s2385_s7 = inlined_call_operand.hbm [shape: bf16[128,256], index: 7, kind: input, shape index: {}]   ;;  %s2386_s8 = inlined_call_operand.vmem [shape: f32[1,256], index: 8, kind: input, shape index: {}]   ;;  %s2387_s9 = inlined_call_operand.hbm [shape: bf16[256,128], index: 9, kind: input, shape index: {}]   ;;  %s2388_s10 = inlined_call_operand.vmem [shape: f32[1,128], index: 10, kind: input, shape index: {}]   ;;  %s2389_s11 = inlined_call_operand.hbm [shape: f32[2,8,128], index: 11, kind: output, shape index: {}]  }
   0x1   :  { %17 = vsyncpa [#allocation6], 0 }
   0x2   :  { %18 = vsyncpa [#allocation9], 0 }
   0x3   :  { %19 = vsyncpa [#allocation12], 0  ;;  %s38_s19 = sshll.u32 %s2379_s1, 4  ;;  %s39_s19 = int_to_ptr.hbm [resolvable:$true] %s38_s19 }
   0x4   :  { %20 = vsyncpa [#allocation4], 0  ;;  %s2066_s20 = smov [#allocation5]   ;;  %s62_s24 = sshll.u32 %s2381_s3, 4  ;;  %s63_s24 = int_to_ptr.hbm [resolvable:$true] %s62_s24 }
   0x5   :  { %s40_s21 = sshll.u32 %s2066_s20, 4  ;;  %s2067_s25 = smov 192   ;;  %s41_s21 = int_to_ptr.vmem [resolvable:$true] %s40_s21 }
   0x6   :  { %s2068_s26 = smov 12   ;;  %s2069_s27 = smov [#allocation8]  }
   0x7   :  { %46 = dma.hbm_to_vmem [thread:$0]  %s39_s19, 3072, %s41_s21, [#allocation6], %s2067_s25, %s2067_s25, %s2068_s26  }
   0x8   :  { %s64_s28 = sshll.u32 %s2069_s27, 4  ;;  %s2070_s29 = smov 64   ;;  %s65_s28 = int_to_ptr.vmem [resolvable:$true] %s64_s28 }
   0x9   :  { %s2071_s30 = smov 4   ;;  %s25_s13 = sshll.u32 %s2378_s0, 4  ;;  %s26_s13 = int_to_ptr.hbm [resolvable:$true] %s25_s13 }
   0xa   :  { %70 = dma.hbm_to_vmem [thread:$0]  %s63_s24, 1024, %s65_s28, [#allocation9], %s2070_s29, %s2070_s29, %s2071_s30  }
   0xb   :  { %s2072_s14 = smov [#allocation2]   ;;  %s52_s17 = sshll.u32 %s2380_s2, 4  ;;  %s53_s17 = int_to_ptr.hbm [resolvable:$true] %s52_s17 }
   0xc   :  { %s27_s3 = sshll.u32 %s2072_s14, 4  ;;  %s2073_s18 = smov 128   ;;  %s28_s3 = int_to_ptr.vmem [resolvable:$true] %s27_s3 }
   0xd   :  { %s2074_s19 = smov 8   ;;  %s2075_s20 = smov [#allocation7]  }
   0xe   :  { %33 = dma.hbm_to_vmem [thread:$0]  %s26_s13, 256, %s28_s3, [#allocation3], %s2073_s18, %s2073_s18, %s2074_s19  }
   0xf   :  { %s54_s21 = sshll.u32 %s2075_s20, 4  ;;  %s81_s0 = sshll.u32 %s2385_s7, 4  ;;  %s55_s21 = int_to_ptr.vmem [resolvable:$true] %s54_s21  ;;  %s82_s0 = int_to_ptr.hbm [resolvable:$true] %s81_s0 }
  0x10   :  { %57 = dma.hbm_to_vmem [thread:$0]  %s53_s17, 48, %s55_s21, [#allocation6]  }
  0x11   :  { %s96_s2 = sshll.u32 %s2387_s9, 4  ;;  %s2076_s26 = smov [#allocation10]   ;;  %s97_s2 = int_to_ptr.hbm [resolvable:$true] %s96_s2 }
  0x12   :  { %s83_s27 = sshll.u32 %s2076_s26, 4  ;;  %s2077_s28 = smov [#allocation11]   ;;  %s84_s27 = int_to_ptr.vmem [resolvable:$true] %s83_s27 }
  0x13   :  { %89 = dma.hbm_to_vmem [thread:$0]  %s82_s0, 2048, %s84_s27, [#allocation9], %s2073_s18, %s2073_s18, %s2074_s19  }
  0x14   :  { %s98_s1 = sshll.u32 %s2077_s28, 4  ;;  %s99_s1 = int_to_ptr.vmem [resolvable:$true] %s98_s1 }
  0x15   :  { %104 = dma.hbm_to_vmem [thread:$0]  %s97_s2, 2048, %s99_s1, [#allocation12], %s2070_s29, %s2070_s29, %s2071_s30  }
  0x16   :  { %2056 = dma.done.wait [#allocation3], 256  }
  0x17   :  { %2057 = vsyncadd [#allocation3], 4294967040 }
  0x18   :  { %2058 = dma.done.wait [#allocation6], 3120  }
  0x19   :  { %2059 = vsyncadd [#allocation6], 4294964176 }
  0x1a   :  { %2060 = dma.done.wait [#allocation9], 3072  }
  0x1b   :  { %2061 = vsyncadd [#allocation9], 4294964224 }
  0x1c   :  { %2062 = dma.done.wait [#allocation12], 2048  }
  0x1d   :  { %2063 = vsyncadd [#allocation12], 4294965248  ;;  %v1783_v0 = vld [vmem:[#allocation5 + $0xac] sm:$0xf]  ;;  %v1578_v1 = vld [vmem:[#allocation5 + $0xb4] sm:$0xf0] }
  0x1e   :  { %v1780_v2 = vld [vmem:[#allocation5 + $0x94] sm:$0xf]  ;;  %v1581_v3 = vor.u32 %v1783_v0, %v1578_v1  ;;  %v1566_v4 = vld [vmem:[#allocation5 + $0x9c] sm:$0xf0]  ;;  %v1576_v5 = vld [vmem:[#allocation5 + $0xa8] sm:$0xf] }
  0x1f   :  { %v1784_v6 = vld [vmem:[#allocation5 + $0xb0] sm:$0xf0]  ;;  %v1564_v8 = vld [vmem:[#allocation5 + $0x90] sm:$0xf]  ;;  %v1569_v9 = vor.u32 %v1780_v2, %v1566_v4  ;;  %v1781_v10 = vld [vmem:[#allocation5 + $0x98] sm:$0xf0] }
  0x20   :  { %v1577_v7 = vor.u32 %v1784_v6, %v1576_v5  ;;  %317 = vmatpush.bf16.msra.mxu1 %v1581_v3  ;;  %v1777_v11 = vld [vmem:[#allocation5 + $0x7c] sm:$0xf]  ;;  %v1554_v12 = vld [vmem:[#allocation5 + $0x84] sm:$0xf0]  ;;  %v1565_v13 = vor.u32 %v1781_v10, %v1564_v8  ;;  %v1552_v14 = vld [vmem:[#allocation5 + $0x78] sm:$0xf] }
  0x21   :  { %v1778_v15 = vld [vmem:[#allocation5 + $0x80] sm:$0xf0]  ;;  %v1557_v16 = vor.u32 %v1777_v11, %v1554_v12  ;;  %v1542_v18 = vld [vmem:[#allocation5 + $0x6c] sm:$0xf0]  ;;  %v1540_v20 = vld [vmem:[#allocation5 + $0x60] sm:$0xf] }
  0x22   :  { %303 = vmatpush.bf16.msra.mxu0 %v1577_v7  ;;  %v1774_v17 = vld [vmem:[#allocation5 + $0x64] sm:$0xf]  ;;  %v1553_v19 = vor.u32 %v1778_v15, %v1552_v14  ;;  %v1775_v21 = vld [vmem:[#allocation5 + $0x68] sm:$0xf0]  ;;  %v1530_v24 = vld [vmem:[#allocation5 + $0x54] sm:$0xf0] }
  0x23   :  { %v1545_v22 = vor.u32 %v1774_v17, %v1542_v18  ;;  %v1771_v23 = vld [vmem:[#allocation5 + $0x4c] sm:$0xf]  ;;  %v1541_v25 = vor.u32 %v1775_v21, %v1540_v20  ;;  %v1528_v26 = vld [vmem:[#allocation5 + $0x48] sm:$0xf]  ;;  %v1772_v27 = vld [vmem:[#allocation5 + $0x50] sm:$0xf0] }
  0x24   :  { %318 = vmatpush.bf16.msra.mxu1 %v1569_v9  ;;  %v1533_v28 = vor.u32 %v1771_v23, %v1530_v24  ;;  %v1768_v29 = vld [vmem:[#allocation5 + $0x34] sm:$0xf]  ;;  %v1518_v30 = vld [vmem:[#allocation5 + $0x3c] sm:$0xf0]  ;;  %v1529_v31 = vor.u32 %v1772_v27, %v1528_v26  ;;  %v1516_v32 = vld [vmem:[#allocation5 + $0x30] sm:$0xf] }
  0x25   :  { %v1769_v33 = vld [vmem:[#allocation5 + $0x38] sm:$0xf0]  ;;  %v1521_v34 = vor.u32 %v1768_v29, %v1518_v30  ;;  %v1506_v36 = vld [vmem:[#allocation5 + $0x24] sm:$0xf0]  ;;  %v1504_v38 = vld [vmem:[#allocation5 + $0x18] sm:$0xf] }
  0x26   :  { %304 = vmatpush.bf16.msra.mxu0 %v1565_v13  ;;  %v1765_v35 = vld [vmem:[#allocation5 + $0x1c] sm:$0xf]  ;;  %v1517_v37 = vor.u32 %v1769_v33, %v1516_v32  ;;  %v1766_v39 = vld [vmem:[#allocation5 + $0x20] sm:$0xf0]  ;;  %v1494_v42 = vld [vmem:[#allocation5 + $0xc] sm:$0xf0] }
  0x27   :  { %v1509_v40 = vor.u32 %v1765_v35, %v1506_v36  ;;  %v1762_v41 = vld [vmem:[#allocation5 + $0x4] sm:$0xf]  ;;  %v1505_v43 = vor.u32 %v1766_v39, %v1504_v38  ;;  %v1492_v44 = vld [vmem:[#allocation5] sm:$0xf]  ;;  %v1763_v45 = vld [vmem:[#allocation5 + $0x8] sm:$0xf0] }
  0x28   :  { %319 = vmatpush.bf16.msra.mxu1 %v1557_v16  ;;  %v1497_v46 = vor.u32 %v1762_v41, %v1494_v42  ;;  %v2172_v47 = vld [vmem:[#allocation2] sm:$0xff]  ;;  %v2174_v48 = vld [vmem:[#allocation2 + $0x8] sm:$0xff]  ;;  %v1493_v49 = vor.u32 %v1763_v45, %v1492_v44  ;;  %v2182_v51 = vld [vmem:[#allocation7] sm:$0x7]  ;;  %vm351_vm0 = vcmask 261120   ;;  %s2078_s7 = smov 96  }
  0x29   :  { %v2178_v50 = vpack.c.bf16 %v2174_v48, %v2172_v47  ;;  %v170_v52 = vperm.slane %v2182_v51, 1  ;;  %v169_v53 = vperm.slane %v2182_v51, 0  ;;  %v1584_v2 = vld [vmem:[#allocation5 + $0xb0] sm:$0xf]  ;;  %v1785_v3 = vld [vmem:[#allocation5 + $0xb8] sm:$0xf0] }
  0x2a   :  { %305 = vmatpush.bf16.msra.mxu0 %v1553_v19  ;;  %v1572_v4 = vld [vmem:[#allocation5 + $0x98] sm:$0xf]  ;;  %v1585_v6 = vor.u32 %v1785_v3, %v1584_v2  ;;  %v1782_v7 = vld [vmem:[#allocation5 + $0xa0] sm:$0xf0]  ;;  %v1560_v13 = vld [vmem:[#allocation5 + $0x80] sm:$0xf] }
  0x2b   :  { %v1573_v10 = vor.u32 %v1782_v7, %v1572_v4  ;;  %v1779_v14 = vld [vmem:[#allocation5 + $0x88] sm:$0xf0]  ;;  %v1548_v19 = vld [vmem:[#allocation5 + $0x68] sm:$0xf]  ;;  %v1776_v20 = vld [vmem:[#allocation5 + $0x70] sm:$0xf0] }
  0x2c   :  { %320 = vmatpush.bf16.msra.mxu1 %v1545_v22  ;;  %331 = vmatpush.bf16.msra.mxu2 %v1585_v6  ;;  %v1561_v18 = vor.u32 %v1779_v14, %v1560_v13  ;;  %v1549_v22 = vor.u32 %v1776_v20, %v1548_v19  ;;  %v1536_v23 = vld [vmem:[#allocation5 + $0x50] sm:$0xf]  ;;  %v1773_v24 = vld [vmem:[#allocation5 + $0x58] sm:$0xf0]  ;;  %s2079_s9 = smov 32   ;;  %vm392_vm1 = vcmask 64512  }
  0x2d   :  { %v1537_v26 = vor.u32 %v1773_v24, %v1536_v23  ;;  %v1524_v27 = vld [vmem:[#allocation5 + $0x38] sm:$0xf]  ;;  %v1512_v30 = vld [vmem:[#allocation5 + $0x20] sm:$0xf]  ;;  %v1500_v33 = vld [vmem:[#allocation5 + $0x8] sm:$0xf] }
  0x2e   :  { %306 = vmatpush.bf16.msra.mxu0 %v1541_v25  ;;  %vm446_vm2 = vcmask 1043456   ;;  %s1474_s20 = sshll.u32 %s2389_s11, 4  ;;  %s1475_s20 = int_to_ptr.hbm [resolvable:$true] %s1474_s20 }
  0x30   :  { %321 = vmatpush.bf16.msra.mxu1 %v1533_v28  ;;  %332 = vmatpush.bf16.msra.mxu2 %v1573_v10  ;;  %v1770_v28 = vld [vmem:[#allocation5 + $0x40] sm:$0xf0] }
  0x31   :  { %v1525_v29 = vor.u32 %v1770_v28, %v1524_v27 }
  0x32   :  { %307 = vmatpush.bf16.msra.mxu0 %v1529_v31  ;;  %v1767_v31 = vld [vmem:[#allocation5 + $0x28] sm:$0xf0] }
  0x33   :  { %v1513_v32 = vor.u32 %v1767_v31, %v1512_v30 }
  0x34   :  { %322 = vmatpush.bf16.msra.mxu1 %v1521_v34  ;;  %333 = vmatpush.bf16.msra.mxu2 %v1561_v18  ;;  %v1764_v34 = vld [vmem:[#allocation5 + $0x10] sm:$0xf0] }
  0x35   :  { %v1501_v35 = vor.u32 %v1764_v34, %v1500_v33 }
  0x36   :  { %308 = vmatpush.bf16.msra.mxu0 %v1517_v37 }
  0x38   :  { %323 = vmatpush.bf16.msra.mxu1 %v1509_v40  ;;  %334 = vmatpush.bf16.msra.mxu2 %v1549_v22 }
  0x3a   :  { %309 = vmatpush.bf16.msra.mxu0 %v1505_v43 }
  0x3c   :  { %324 = vmatpush.bf16.msra.mxu1 %v1497_v46  ;;  %335 = vmatpush.bf16.msra.mxu2 %v1537_v26 }
  0x3e   :  { %310 = vmatpush.bf16.msra.mxu0 %v1493_v49 }
  0x3f   :  { %325 = vmatmul.bf16.vlgmr.msra.gmra.mxu1 %v2178_v50 }
  0x40   :  { %336 = vmatpush.bf16.msra.mxu2 %v1525_v29 }
  0x41   :  { %311 = vmatmul.bf16.vlgmr.msra.gmra.mxu0 %v2178_v50 }
  0x44   :  { %337 = vmatpush.bf16.msra.mxu2 %v1513_v32 }
  0x48   :  { %338 = vmatpush.bf16.msra.mxu2 %v1501_v35 }
  0x4b   :  { %339 = vmatmul.bf16.vlgmr.msra.gmra.mxu2 %v2178_v50 }
  0xbc   :  { %v326_v54 = vpop.f32.mrf.mxu1 }
  0xbd   :  { %v327_v55 = vadd.f32 %v326_v54, %v170_v52 }
  0xbe   :  { %v312_v56 = vpop.f32.mrf.mxu0 }
  0xbf   :  { %v313_v57 = vadd.f32 %v312_v56, %v169_v53  ;;  %v347_v58 = vpack.c.bf16 %v327_v55, %v327_v55 }
  0xc1   :  { %v490_v59 = vunpack.c.l.b16 %v347_v58  ;;  %v356_v60 = vsel %vm351_vm0, %v347_v58, 0  ;;  %v345_v61 = vpack.c.bf16 %v313_v57, %v313_v57 }
  0xc2   :  { %365 = vmatpush.bf16.xpose.msra.mxu3 %v356_v60 }
  0xc3   :  { %v491_v62 = vpack.c.b16 %v490_v59, %v490_v59  ;;  %v485_v5 = vunpack.c.l.b16 %v345_v61 }
  0xc4   :  { %v328_v63 = vpop.f32.mrf.mxu1 }
  0xc5   :  { %v329_v0 = vadd.f32 %v328_v63, %v170_v52  ;;  %646 = vrot.lane.b32.xlu2 %v491_v62, %s2070_s29  ;;  %492 = vrot.lane.b32.xlu0 %v491_v62, %s2078_s7  ;;  %v486_v15 = vpack.c.b16 %v485_v5, %v485_v5 }
  0xc6   :  { %v314_v1 = vpop.f32.mrf.mxu0 }
  0xc7   :  { %v348_v8 = vpack.c.bf16 %v329_v0, %v329_v0  ;;  %v315_v9 = vadd.f32 %v314_v1, %v169_v53  ;;  %v171_v1 = vperm.slane %v2182_v51, 2 }
  0xc9   :  { %v519_v11 = vunpack.c.l.b16 %v348_v8  ;;  %1586 = vmatmul.msk.bf16.vlgmr.msra.gmra.mxu3 %vm351_vm0, %v345_v61  ;;  %v375_v12 = vsel %vm351_vm0, %v348_v8, 0  ;;  %v346_v17 = vpack.c.bf16 %v315_v9, %v315_v9 }
  0xca   :  { %384 = vmatpush.bf16.xpose.msrb.mxu3 %v375_v12 }
  0xcb   :  { %v520_v16 = vpack.c.b16 %v519_v11, %v519_v11  ;;  %v514_v21 = vunpack.c.l.b16 %v346_v17 }
  0xcd   :  { %521 = vrot.lane.b32.xlu1 %v520_v16, %s2078_s7  ;;  %669 = vrot.lane.b32.xlu2 %v520_v16, %s2070_s29  ;;  %v515_v25 = vpack.c.b16 %v514_v21, %v514_v21 }
  0xce   :  { %487 = vrot.lane.b32.xlu0 %v486_v15, %s2078_s7  ;;  %v340_v2 = vpop.f32.mrf.mxu2 }
  0xcf   :  { %v341_v3 = vadd.f32 %v340_v2, %v171_v1 }
  0xd1   :  { %v349_v4 = vpack.c.bf16 %v341_v3, %v341_v3 }
  0xd3   :  { %v448_v5 = vsel %vm446_vm2, %v349_v4, 0 }
  0xd4   :  { %457 = vmatpush.bf16.msra.mxu3 %v448_v5 }
  0xd5   :  { %788 = vrot.lane.b32.xlu2 %v491_v62, %s2079_s9  ;;  %516 = vrot.lane.b32.xlu1 %v515_v25, %s2078_s7 }
  0xd6   :  { %644 = vrot.lane.b32.xlu0 %v486_v15, %s2070_s29  ;;  %v342_v6 = vpop.f32.mrf.mxu2 }
  0xd7   :  { %v343_v7 = vadd.f32 %v342_v6, %v171_v1 }
  0xd9   :  { %1587 = vmatmul.msk.bf16.vlgmr.msrb.gmra.mxu3 %vm351_vm0, %v346_v17  ;;  %v2219_v8 = vpack.c.bf16 %v343_v7, %v343_v7 }
  0xdb   :  { %v467_v9 = vsel %vm446_vm2, %v2219_v8, 0 }
  0xdc   :  { %476 = vmatpush.bf16.msrb.mxu0 %v467_v9 }
  0xdd   :  { %809 = vrot.lane.b32.xlu2 %v515_v25, %s2079_s9  ;;  %667 = vrot.lane.b32.xlu1 %v515_v25, %s2070_s29 }
  0xde   :  { %811 = vrot.lane.b32.xlu0 %v520_v16, %s2079_s9 }
  0xe5   :  { %786 = vrot.lane.b32.xlu1 %v486_v15, %s2079_s9 }
 0x11f   :  { %v647_v36 = vpop.permute.xlu2 %646 }
 0x120   :  { %v652_v37 = vsel %vm351_vm0, %v647_v36, 0 }
 0x121   :  { %661 = vmatpush.bf16.xpose.msrb.mxu1 %v652_v37 }
 0x127   :  { %v670_v38 = vpop.permute.xlu2 %669 }
 0x128   :  { %v675_v46 = vsel %vm351_vm0, %v670_v38, 0 }
 0x12f   :  { %v789_v39 = vpop.permute.xlu2 %788 }
 0x130   :  { %v794_v40 = vsel %vm351_vm0, %v789_v39, 0 }
 0x131   :  { %803 = vmatpush.bf16.xpose.msra.mxu1 %v794_v40 }
 0x137   :  { %v493_v41 = vpop.permute.xlu0 %492  ;;  %v810_v0 = vpop.permute.xlu2 %809 }
 0x138   :  { %v498_v42 = vsel %vm351_vm0, %v493_v41, 0 }
 0x139   :  { %507 = vmatpush.bf16.xpose.msrb.mxu2 %v498_v42 }
 0x13f   :  { %v522_v43 = vpop.permute.xlu1 %521 }
 0x140   :  { %v527_v44 = vsel %vm351_vm0, %v522_v43, 0  ;;  %v488_v45 = vpop.permute.xlu0 %487  ;;  %v595_v43 = vunpack.c.l.b16 %v349_v4 }
 0x141   :  { %1590 = vmatmul.msk.bf16.vlgmr.msrb.gmra.mxu2 %vm351_vm0, %v488_v45 }
 0x142   :  { %536 = vmatpush.bf16.xpose.msra.mxu2 %v527_v44  ;;  %v2246_v44 = vpack.c.b16 %v595_v43, %v595_v43 }
 0x147   :  { %v517_v49 = vpop.permute.xlu1 %516 }
 0x148   :  { %v645_v50 = vpop.permute.xlu0 %644 }
 0x149   :  { %1594 = vmatmul.msk.bf16.vlgmr.msrb.gmra.mxu1 %vm351_vm0, %v645_v50 }
 0x14a   :  { %684 = vmatpush.bf16.xpose.msrb.mxu2 %v675_v46 }
 0x14c   :  { %v367_v52 = vpop.f32.mrf.mxu3 }
 0x14d   :  { %v390_v53 = vmul.f32 0.17677669, %v367_v52 }
 0x14f   :  { %v668_v54 = vpop.permute.xlu1 %667  ;;  %v393_v55 = vsel %vm392_vm1, %v390_v53, -inf }
 0x150   :  { %v812_v56 = vpop.permute.xlu0 %811  ;;  %394 = vmax.xlane.f32.xlu0 %v393_v55 }
 0x151   :  { %v817_v57 = vsel %vm351_vm0, %v812_v56, 0  ;;  %1591 = vmatmul.msk.bf16.vlgmr.msra.gmra.mxu2 %vm351_vm0, %v517_v49 }
 0x152   :  { %826 = vmatpush.bf16.xpose.msra.mxu2 %v817_v57 }
 0x154   :  { %v369_v58 = vpop.f32.mrf.mxu3 }
 0x157   :  { %v787_v59 = vpop.permute.xlu1 %786 }
 0x159   :  { %1598 = vmatmul.msk.bf16.vlgmr.msra.gmra.mxu1 %vm351_vm0, %v787_v59 }
 0x15c   :  { %v386_v60 = vpop.f32.mrf.mxu3 }
 0x15d   :  { %v391_v61 = vmul.f32 0.17677669, %v386_v60 }
 0x15f   :  { %v396_v62 = vsel %vm392_vm1, %v391_v61, -inf }
 0x160   :  { %397 = vmax.xlane.f32.xlu1 %v396_v62 }
 0x161   :  { %1595 = vmatmul.msk.bf16.vlgmr.msrb.gmra.mxu2 %vm351_vm0, %v668_v54 }
 0x164   :  { %v388_v63 = vpop.f32.mrf.mxu3 }
 0x171   :  { %1599 = vmatmul.msk.bf16.vlgmr.msra.gmra.mxu2 %vm351_vm0, %v810_v0 }
 0x1c3   :  { %v395_v10 = vpop.xlane.xlu0 %394 }
 0x1c4   :  { %v509_v11 = vpop.f32.mrf.mxu2  ;;  %v399_v12 = vsub.f32 %v390_v53, %v395_v10 }
 0x1c5   :  { %v542_v13 = vmul.f32 0.17677669, %v509_v11 }
 0x1c6   :  { %v401_v51 = vmul.f32 1.442695, %v399_v12  ;;  %v663_v14 = vpop.f32.mrf.mxu1 }
 0x1c7   :  { %v690_v15 = vmul.f32 0.17677669, %v663_v14  ;;  %v544_v16 = vsel %vm392_vm1, %v542_v13, -inf }
 0x1c8   :  { %1846 = vpow2.f32 %v401_v51  ;;  %545 = vmax.xlane.f32.xlu2 %v544_v16 }
 0x1c9   :  { %v692_v17 = vsel %vm392_vm1, %v690_v15, -inf }
 0x1ca   :  { %693 = vmax.xlane.f32.xlu0 %v692_v17 }
 0x1cc   :  { %v511_v18 = vpop.f32.mrf.mxu2 }
 0x1ce   :  { %v2225_v19 = vpop.eup %1846  ;;  %v665_v20 = vpop.f32.mrf.mxu1 }
 0x1cf   :  { %v405_v21 = vsel %vm392_vm1, %v2225_v19, 0.0 }
 0x1d2   :  { %406 = vadd.xlane.f32.xlu0 %v405_v21 }
 0x1d3   :  { %v398_v22 = vpop.xlane.xlu1 %397 }
 0x1d4   :  { %v538_v23 = vpop.f32.mrf.mxu2  ;;  %v400_v25 = vsub.f32 %v391_v61, %v398_v22 }
 0x1d5   :  { %v2229_v24 = vmul.f32 0.17677669, %v538_v23 }
 0x1d6   :  { %v805_v26 = vpop.f32.mrf.mxu1  ;;  %v403_v28 = vmul.f32 1.442695, %v400_v25 }
 0x1d7   :  { %v547_v27 = vsel %vm392_vm1, %v2229_v24, -inf  ;;  %v832_v29 = vmul.f32 0.17677669, %v805_v26 }
 0x1d8   :  { %548 = vmax.xlane.f32.xlu2 %v547_v27  ;;  %1848 = vpow2.f32 %v403_v28 }
 0x1d9   :  { %v834_v32 = vsel %vm392_vm1, %v832_v29, -inf }
 0x1dc   :  { %v540_v30 = vpop.f32.mrf.mxu2 }
 0x1de   :  { %v807_v31 = vpop.f32.mrf.mxu1  ;;  %v2234_v33 = vpop.eup %1848 }
 0x1df   :  { %v408_v37 = vsel %vm392_vm1, %v2234_v33, 0.0 }
 0x1e0   :  { %835 = vmax.xlane.f32.xlu2 %v834_v32 }
 0x1e4   :  { %v686_v34 = vpop.f32.mrf.mxu2 }
 0x1e5   :  { %v2236_v35 = vmul.f32 0.17677669, %v686_v34 }
 0x1e7   :  { %v695_v36 = vsel %vm392_vm1, %v2236_v35, -inf }
 0x1e8   :  { %696 = vmax.xlane.f32.xlu1 %v695_v36  ;;  %409 = vadd.xlane.f32.xlu2 %v408_v37 }
 0x1ec   :  { %v688_v38 = vpop.f32.mrf.mxu2 }
 0x1f4   :  { %v828_v39 = vpop.f32.mrf.mxu2 }
 0x1f5   :  { %v2242_v40 = vmul.f32 0.17677669, %v828_v39 }
 0x1f7   :  { %v837_v41 = vsel %vm392_vm1, %v2242_v40, -inf }
 0x1f8   :  { %838 = vmax.xlane.f32.xlu1 %v837_v41 }
 0x1fc   :  { %v830_v42 = vpop.f32.mrf.mxu2 }
 0x211   :  { %742 = vrot.lane.b32.xlu1 %v2246_v44, %s2070_s29 }
 0x23b   :  { %v546_v45 = vpop.xlane.xlu2 %545 }
 0x23c   :  { %v550_v46 = vsub.f32 %v542_v13, %v546_v45 }
 0x23d   :  { %v694_v49 = vpop.xlane.xlu0 %693 }
 0x23e   :  { %v552_v50 = vmul.f32 1.442695, %v550_v46  ;;  %v698_v52 = vsub.f32 %v690_v15, %v694_v49  ;;  %v619_v15 = vunpack.c.l.b16 %v2219_v8 }
 0x240   :  { %1850 = vpow2.f32 %v552_v50  ;;  %v700_v53 = vmul.f32 1.442695, %v698_v52 }
 0x242   :  { %1852 = vpow2.f32 %v700_v53 }
 0x245   :  { %v407_v54 = vpop.xlane.xlu0 %406 }
 0x246   :  { %v2250_v55 = vpop.eup %1850  ;;  %1854 = vrcp.f32 %v407_v54  ;;  %v422_v63 = vand.u32 2147483648, %v407_v54  ;;  %v420_v1 = vand.u32 2147483647, %v407_v54  ;;  %vm416_vm4 = vweird.f32 %v407_v54 }
 0x247   :  { %v556_v56 = vsel %vm392_vm1, %v2250_v55, 0.0 }
 0x248   :  { %v2254_v57 = vpop.eup %1852  ;;  %557 = vadd.xlane.f32.xlu0 %v556_v56  ;;  %v423_v4 = vor.u32 1.1754944e-38, %v422_v63  ;;  %vm421_vm6 = vcmp.eq.f32.partialorder %v420_v1, 8.507059e+37 }
 0x249   :  { %v704_v58 = vsel %vm392_vm1, %v2254_v57, 0.0 }
 0x24a   :  { %705 = vadd.xlane.f32.xlu2 %v704_v58 }
 0x24b   :  { %v549_v59 = vpop.xlane.xlu2 %548 }
 0x24c   :  { %v1855_v60 = vpop.eup %1854  ;;  %v551_v9 = vsub.f32 %v2229_v24, %v549_v59 }
 0x24d   :  { %v412_v61 = vmul.f32 %v1855_v60, %v407_v54  ;;  %vm417_vm3 = vweird.f32 %v1855_v60 }
 0x24e   :  { %vm418_vm5 = vmor %vm416_vm4, %vm417_vm3  ;;  %v554_v13 = vmul.f32 1.442695, %v551_v9 }
 0x24f   :  { %v413_v62 = vsub.f32 1.0, %v412_v61 }
 0x251   :  { %v414_v0 = vmul.f32 %v1855_v60, %v413_v62 }
 0x253   :  { %v415_v2 = vadd.f32 %v1855_v60, %v414_v0  ;;  %v836_v3 = vpop.xlane.xlu2 %835 }
 0x254   :  { %v840_v5 = vsub.f32 %v832_v29, %v836_v3 }
 0x255   :  { %v419_v6 = vsel %vm418_vm5, %v1855_v60, %v415_v2 }
 0x256   :  { %v424_v7 = vsel %vm421_vm6, %v423_v4, %v419_v6  ;;  %v842_v10 = vmul.f32 1.442695, %v840_v5 }
 0x257   :  { %v425_v11 = vmul.f32 %v2225_v19, %v424_v7  ;;  %v620_v19 = vpack.c.b16 %v619_v15, %v619_v15 }
 0x258   :  { %1856 = vpow2.f32 %v842_v10 }
 0x259   :  { %v441_v12 = vpack.c.bf16 %v425_v11, %v425_v11 }
 0x25b   :  { %1588 = vmatmul.msk.bf16.vlgmr.msra.gmra.mxu3 %vm392_vm1, %v441_v12  ;;  %v410_v51 = vpop.xlane.xlu2 %409  ;;  %v697_v14 = vpop.xlane.xlu1 %696 }
 0x25c   :  { %1858 = vrcp.f32 %v410_v51  ;;  %597 = vrot.lane.b32.xlu0 %v2246_v44, %s2078_s7  ;;  %v699_v17 = vsub.f32 %v2236_v35, %v697_v14  ;;  %v437_v24 = vand.u32 2147483648, %v410_v51  ;;  %v435_v26 = vand.u32 2147483647, %v410_v51 }
 0x25d   :  { %1860 = vpow2.f32 %v554_v13  ;;  %vm431_vm8 = vweird.f32 %v410_v51 }
 0x25e   :  { %v2264_v16 = vpop.eup %1856  ;;  %v702_v21 = vmul.f32 1.442695, %v699_v17  ;;  %v438_v29 = vor.u32 1.1754944e-38, %v437_v24  ;;  %vm436_vm10 = vcmp.eq.f32.partialorder %v435_v26, 8.507059e+37 }
 0x25f   :  { %v846_v18 = vsel %vm392_vm1, %v2264_v16, 0.0 }
 0x260   :  { %847 = vadd.xlane.f32.xlu1 %v846_v18  ;;  %1862 = vpow2.f32 %v702_v21 }
 0x262   :  { %v1859_v20 = vpop.eup %1858  ;;  %621 = vrot.lane.b32.xlu2 %v620_v19, %s2078_s7 }
 0x263   :  { %v427_v22 = vmul.f32 %v1859_v20, %v410_v51  ;;  %v2270_v8 = vpop.eup %1860  ;;  %vm432_vm7 = vweird.f32 %v1859_v20 }
 0x264   :  { %v559_v27 = vsel %vm392_vm1, %v2270_v8, 0.0  ;;  %vm433_vm9 = vmor %vm431_vm8, %vm432_vm7 }
 0x265   :  { %v428_v23 = vsub.f32 1.0, %v427_v22 }
 0x266   :  { %v2275_v31 = vpop.eup %1862 }
 0x267   :  { %v429_v25 = vmul.f32 %v1859_v20, %v428_v23  ;;  %v707_v35 = vsel %vm392_vm1, %v2275_v31, 0.0 }
 0x268   :  { %560 = vadd.xlane.f32.xlu1 %v559_v27 }
 0x269   :  { %v430_v28 = vadd.f32 %v1859_v20, %v429_v25 }
 0x26a   :  { %763 = vrot.lane.b32.xlu2 %v620_v19, %s2070_s29 }
 0x26b   :  { %v434_v30 = vsel %vm433_vm9, %v1859_v20, %v430_v28  ;;  %v839_v37 = vpop.xlane.xlu1 %838 }
 0x26c   :  { %v439_v32 = vsel %vm436_vm10, %v438_v29, %v434_v30  ;;  %v841_v38 = vsub.f32 %v2242_v40, %v839_v37 }
 0x26d   :  { %v440_v34 = vmul.f32 %v2234_v33, %v439_v32 }
 0x26e   :  { %v844_v39 = vmul.f32 1.442695, %v841_v38 }
 0x26f   :  { %v442_v36 = vpack.c.bf16 %v440_v34, %v440_v34 }
 0x270   :  { %708 = vadd.xlane.f32.xlu1 %v707_v35  ;;  %1864 = vpow2.f32 %v844_v39 }
 0x271   :  { %1589 = vmatmul.msk.bf16.vlgmr.msrb.gmra.mxu0 %vm392_vm1, %v442_v36 }
 0x272   :  { %884 = vrot.lane.b32.xlu2 %v2246_v44, %s2079_s9 }
 0x276   :  { %v2284_v41 = vpop.eup %1864 }
 0x277   :  { %v849_v33 = vsel %vm392_vm1, %v2284_v41, 0.0 }
 0x283   :  { %v743_v60 = vpop.permute.xlu1 %742 }
 0x284   :  { %v748_v6 = vsel %vm446_vm2, %v743_v60, 0 }
 0x286   :  { %850 = vadd.xlane.f32.xlu0 %v849_v33 }
 0x289   :  { %905 = vrot.lane.b32.xlu1 %v620_v19, %s2079_s9 }
 0x2bb   :  { %v558_v42 = vpop.xlane.xlu0 %557 }
 0x2bc   :  { %1866 = vrcp.f32 %v558_v42  ;;  %v573_v40 = vand.u32 2147483648, %v558_v42  ;;  %v571_v54 = vand.u32 2147483647, %v558_v42  ;;  %vm567_vm12 = vweird.f32 %v558_v42 }
 0x2bd   :  { %v706_v43 = vpop.xlane.xlu2 %705 }
 0x2be   :  { %1868 = vrcp.f32 %v706_v43  ;;  %v574_v59 = vor.u32 1.1754944e-38, %v573_v40  ;;  %vm572_vm14 = vcmp.eq.f32.partialorder %v571_v54, 8.507059e+37  ;;  %v721_v11 = vand.u32 2147483648, %v706_v43 }
 0x2bf   :  { %vm715_vm3 = vweird.f32 %v706_v43 }
 0x2c0   :  { %v722_v14 = vor.u32 1.1754944e-38, %v721_v11 }
 0x2c2   :  { %v1867_v45 = vpop.eup %1866 }
 0x2c3   :  { %v563_v46 = vmul.f32 %v1867_v45, %v558_v42  ;;  %vm568_vm11 = vweird.f32 %v1867_v45 }
 0x2c4   :  { %v1869_v49 = vpop.eup %1868  ;;  %vm569_vm13 = vmor %vm567_vm12, %vm568_vm11 }
 0x2c5   :  { %v564_v44 = vsub.f32 1.0, %v563_v46  ;;  %v622_v50 = vpop.permute.xlu2 %621  ;;  %v711_v56 = vmul.f32 %v1869_v49, %v706_v43  ;;  %vm716_vm15 = vweird.f32 %v1869_v49 }
 0x2c6   :  { %v627_v52 = vsel %vm446_vm2, %v622_v50, 0  ;;  %vm717_vm4 = vmor %vm715_vm3, %vm716_vm15 }
 0x2c7   :  { %v565_v53 = vmul.f32 %v1867_v45, %v564_v44  ;;  %636 = vmatpush.bf16.msra.mxu0 %v627_v52  ;;  %v712_v62 = vsub.f32 1.0, %v711_v56 }
 0x2c9   :  { %v566_v58 = vadd.f32 %v1867_v45, %v565_v53  ;;  %v713_v4 = vmul.f32 %v1869_v49, %v712_v62 }
 0x2cb   :  { %v570_v61 = vsel %vm569_vm13, %v1867_v45, %v566_v58  ;;  %v714_v9 = vadd.f32 %v1869_v49, %v713_v4 }
 0x2cc   :  { %v575_v63 = vsel %vm572_vm14, %v574_v59, %v570_v61 }
 0x2cd   :  { %v576_v0 = vmul.f32 %v2250_v55, %v575_v63  ;;  %v764_v1 = vpop.permute.xlu2 %763  ;;  %v719_v55 = vand.u32 2147483647, %v706_v43  ;;  %v718_v51 = vsel %vm717_vm4, %v1869_v49, %v714_v9 }
 0x2ce   :  { %v769_v2 = vsel %vm446_vm2, %v764_v1, 0  ;;  %v598_v3 = vpop.permute.xlu0 %597 }
 0x2cf   :  { %v603_v5 = vsel %vm446_vm2, %v598_v3, 0  ;;  %778 = vmatpush.bf16.msrb.mxu0 %v769_v2  ;;  %v592_v7 = vpack.c.bf16 %v576_v0, %v576_v0  ;;  %vm720_vm5 = vcmp.eq.f32.partialorder %v719_v55, 8.507059e+37 }
 0x2d0   :  { %612 = vmatpush.bf16.msrb.mxu3 %v603_v5  ;;  %v723_v17 = vsel %vm720_vm5, %v722_v14, %v718_v51 }
 0x2d1   :  { %v724_v20 = vmul.f32 %v2254_v57, %v723_v17 }
 0x2d3   :  { %1592 = vmatmul.msk.bf16.vlgmr.msrb.gmra.mxu3 %vm392_vm1, %v592_v7  ;;  %v848_v10 = vpop.xlane.xlu1 %847  ;;  %v740_v24 = vpack.c.bf16 %v724_v20, %v724_v20 }
 0x2d4   :  { %757 = vmatpush.bf16.msra.mxu3 %v748_v6  ;;  %1870 = vrcp.f32 %v848_v10  ;;  %v863_v29 = vand.u32 2147483648, %v848_v10  ;;  %vm857_vm7 = vweird.f32 %v848_v10  ;;  %v861_v30 = vand.u32 2147483647, %v848_v10 }
 0x2d5   :  { %v885_v12 = vpop.permute.xlu2 %884 }
 0x2d6   :  { %v890_v13 = vsel %vm446_vm2, %v885_v12, 0  ;;  %v864_v38 = vor.u32 1.1754944e-38, %v863_v29  ;;  %vm862_vm10 = vcmp.eq.f32.partialorder %v861_v30, 8.507059e+37 }
 0x2d8   :  { %899 = vmatpush.bf16.msrb.mxu3 %v890_v13 }
 0x2da   :  { %v1871_v15 = vpop.eup %1870 }
 0x2db   :  { %v853_v18 = vmul.f32 %v1871_v15, %v848_v10  ;;  %v561_v19 = vpop.xlane.xlu1 %560  ;;  %vm858_vm6 = vweird.f32 %v1871_v15 }
 0x2dc   :  { %1872 = vrcp.f32 %v561_v19  ;;  %vm859_vm8 = vmor %vm857_vm7, %vm858_vm6  ;;  %v588_v34 = vand.u32 2147483648, %v561_v19  ;;  %v586_v37 = vand.u32 2147483647, %v561_v19  ;;  %vm582_vm11 = vweird.f32 %v561_v19 }
 0x2dd   :  { %v854_v21 = vsub.f32 1.0, %v853_v18 }
 0x2de   :  { %v2297_v22 = vpop.f32.mrf.mxu3  ;;  %v589_v43 = vor.u32 1.1754944e-38, %v588_v34  ;;  %vm587_vm13 = vcmp.eq.f32.partialorder %v586_v37, 8.507059e+37 }
 0x2df   :  { %v855_v23 = vmul.f32 %v1871_v15, %v854_v21 }
 0x2e1   :  { %v856_v26 = vadd.f32 %v1871_v15, %v855_v23 }
 0x2e2   :  { %v1873_v25 = vpop.eup %1872 }
 0x2e3   :  { %v578_v27 = vmul.f32 %v1873_v25, %v561_v19  ;;  %1596 = vmatmul.msk.bf16.vlgmr.msra.gmra.mxu3 %vm392_vm1, %v740_v24  ;;  %v709_v28 = vpop.xlane.xlu1 %708  ;;  %v860_v35 = vsel %vm859_vm8, %v1871_v15, %v856_v26  ;;  %vm583_vm9 = vweird.f32 %v1873_v25 }
 0x2e4   :  { %1874 = vrcp.f32 %v709_v28  ;;  %v865_v42 = vsel %vm862_vm10, %v864_v38, %v860_v35  ;;  %vm584_vm12 = vmor %vm582_vm11, %vm583_vm9  ;;  %v736_v59 = vand.u32 2147483648, %v709_v28  ;;  %vm730_vm15 = vweird.f32 %v709_v28 }
 0x2e5   :  { %v579_v32 = vsub.f32 1.0, %v578_v27  ;;  %v866_v44 = vmul.f32 %v2264_v16, %v865_v42  ;;  %v734_v60 = vand.u32 2147483647, %v709_v28 }
 0x2e6   :  { %v461_v57 = vpop.f32.mrf.mxu3  ;;  %v737_v16 = vor.u32 1.1754944e-38, %v736_v59  ;;  %v1786_v59 = vld [vmem:[#allocation8] sm:$0xff] }
 0x2e7   :  { %v580_v36 = vmul.f32 %v1873_v25, %v579_v32  ;;  %v882_v58 = vpack.c.bf16 %v866_v44, %v866_v44  ;;  %vm735_vm4 = vcmp.eq.f32.partialorder %v734_v60, 8.507059e+37  ;;  %v1793_v44 = vld [vmem:[#allocation8 + $0x38] sm:$0xff] }
 0x2e8   :  { %1048 = vmatpush.bf16.msrb.mxu1 %v1793_v44 }
 0x2e9   :  { %v581_v39 = vadd.f32 %v1873_v25, %v580_v36 }
 0x2ea   :  { %v1875_v33 = vpop.eup %1874 }
 0x2eb   :  { %v585_v45 = vsel %vm584_vm12, %v1873_v25, %v581_v39  ;;  %v726_v46 = vmul.f32 %v1875_v33, %v709_v28  ;;  %vm731_vm14 = vweird.f32 %v1875_v33 }
 0x2ec   :  { %v590_v49 = vsel %vm587_vm13, %v589_v43, %v585_v45  ;;  %vm732_vm3 = vmor %vm730_vm15, %vm731_vm14 }
 0x2ed   :  { %v591_v50 = vmul.f32 %v2270_v8, %v590_v49  ;;  %v727_v40 = vsub.f32 1.0, %v726_v46 }
 0x2ee   :  { %v2302_v52 = vpop.f32.mrf.mxu0 }
 0x2ef   :  { %v728_v53 = vmul.f32 %v1875_v33, %v727_v40  ;;  %v593_v54 = vpack.c.bf16 %v591_v50, %v591_v50  ;;  %v1792_v50 = vld [vmem:[#allocation8 + $0x30] sm:$0xff]  ;;  %v1791_v40 = vld [vmem:[#allocation8 + $0x28] sm:$0xff] }
 0x2f0   :  { %1049 = vmatpush.bf16.msrb.mxu1 %v1792_v50  ;;  %v1668_v50 = vld [vmem:[#allocation10 + $0x40] sm:$0xf] }
 0x2f1   :  { %v729_v56 = vadd.f32 %v1875_v33, %v728_v53  ;;  %1593 = vmatmul.msk.bf16.vlgmr.msra.gmra.mxu0 %vm392_vm1, %v593_v54  ;;  %v1790_v53 = vld [vmem:[#allocation8 + $0x20] sm:$0xff]  ;;  %v1789_v54 = vld [vmem:[#allocation8 + $0x18] sm:$0xff] }
 0x2f3   :  { %1600 = vmatmul.msk.bf16.vlgmr.msrb.gmra.mxu3 %vm392_vm1, %v882_v58  ;;  %v733_v61 = vsel %vm732_vm3, %v1875_v33, %v729_v56  ;;  %v1788_v56 = vld [vmem:[#allocation8 + $0x10] sm:$0xff]  ;;  %v1787_v58 = vld [vmem:[#allocation8 + $0x8] sm:$0xff] }
 0x2f4   :  { %v738_v8 = vsel %vm735_vm4, %v737_v16, %v733_v61  ;;  %1050 = vmatpush.bf16.msrb.mxu1 %v1791_v40  ;;  %v1803_v40 = vld [vmem:[#allocation10 + $0x44] sm:$0xf0] }
 0x2f5   :  { %v739_v0 = vmul.f32 %v2275_v31, %v738_v8 }
 0x2f6   :  { %v480_v62 = vpop.f32.mrf.mxu0 }
 0x2f7   :  { %v741_v3 = vpack.c.bf16 %v739_v0, %v739_v0  ;;  %v482_v62 = vpack.c.bf16 %v2297_v22, %v2297_v22  ;;  %v1842_v22 = vld [vmem:[%s2382_s4] ss:$0 sm:$0xff] }
 0x2f8   :  { %1051 = vmatpush.bf16.msrb.mxu1 %v1790_v53  ;;  %v1802_v53 = vld [vmem:[#allocation10 + $0x44] sm:$0xf] }
 0x2f9   :  { %v851_v63 = vpop.xlane.xlu0 %850 }
 0x2fa   :  { %1876 = vrcp.f32 %v851_v63  ;;  %v878_v7 = vand.u32 2147483648, %v851_v63  ;;  %v876_v10 = vand.u32 2147483647, %v851_v63  ;;  %vm872_vm6 = vweird.f32 %v851_v63 }
 0x2fb   :  { %v906_v1 = vpop.permute.xlu1 %905 }
 0x2fc   :  { %v911_v2 = vsel %vm446_vm2, %v906_v1, 0  ;;  %v879_v55 = vor.u32 1.1754944e-38, %v878_v7  ;;  %vm877_vm8 = vcmp.eq.f32.partialorder %v876_v10, 8.507059e+37  ;;  %1052 = vmatpush.bf16.msrb.mxu1 %v1789_v54  ;;  %vm969_vm2 = vcmask 785408  }
 0x2fd   :  { %920 = vmatpush.bf16.msra.mxu0 %v911_v2  ;;  %v1669_v54 = vor.u32 %v1803_v40, %v1668_v50  ;;  %v2353_v40 = vld [vmem:[%s2384_s6] ss:$0 sm:$0xff] }
 0x300   :  { %v1877_v4 = vpop.eup %1876  ;;  %1053 = vmatpush.bf16.msrb.mxu1 %v1788_v56  ;;  %v1670_v56 = vld [vmem:[#allocation10 + $0x48] sm:$0xf0] }
 0x301   :  { %v868_v5 = vmul.f32 %v1877_v4, %v851_v63  ;;  %1597 = vmatmul.msk.bf16.vlgmr.msrb.gmra.mxu0 %vm392_vm1, %v741_v3  ;;  %vm873_vm5 = vweird.f32 %v1877_v4  ;;  %v483_v63 = vpack.c.bf16 %v2302_v52, %v2302_v52 }
 0x302   :  { %vm874_vm7 = vmor %vm872_vm6, %vm873_vm5 }
 0x303   :  { %v869_v6 = vsub.f32 1.0, %v868_v5 }
 0x304   :  { %1054 = vmatpush.bf16.msrb.mxu1 %v1787_v58  ;;  %v1673_v58 = vor.u32 %v1802_v53, %v1670_v56 }
 0x305   :  { %v870_v9 = vmul.f32 %v1877_v4, %v869_v6 }
 0x307   :  { %v871_v11 = vadd.f32 %v1877_v4, %v870_v9 }
 0x308   :  { %1055 = vmatpush.bf16.msrb.mxu1 %v1786_v59  ;;  %v1660_v59 = vld [vmem:[#allocation10 + $0x30] sm:$0xf] }
 0x309   :  { %v875_v12 = vsel %vm874_vm7, %v1877_v4, %v871_v11 }
 0x30a   :  { %v880_v31 = vsel %vm877_vm8, %v879_v55, %v875_v12 }
 0x30b   :  { %v881_v13 = vmul.f32 %v2284_v41, %v880_v31 }
 0x30d   :  { %v883_v51 = vpack.c.bf16 %v881_v13, %v881_v13 }
 0x311   :  { %1601 = vmatmul.msk.bf16.vlgmr.msra.gmra.mxu0 %vm392_vm1, %v883_v51  ;;  %vm964_vm1 = vcmask 523264  }
 0x356   :  { %v614_v14 = vpop.f32.mrf.mxu3 }
 0x357   :  { %v642_v15 = vpack.c.bf16 %v614_v14, %v614_v14  ;;  %v2080_v14 = vmov 128.0  }
 0x358   :  { %1878 = vrcp.f32 %v2080_v14 }
 0x359   :  { %v930_v17 = vunpack.c.l.b16 %v642_v15 }
 0x35b   :  { %v932_v18 = vpack.c.b16 %v930_v17, %v930_v17 }
 0x35d   :  { %934 = vrot.lane.b32.xlu2 %v932_v18, %s2079_s9 }
 0x35e   :  { %v616_v19 = vpop.f32.mrf.mxu3  ;;  %v1879_v15 = vpop.eup %1878 }
 0x35f   :  { %v1071_v17 = vmul.f32 128.0, %v1879_v15 }
 0x361   :  { %v1072_v18 = vsub.f32 1.0, %v1071_v17  ;;  %v1817_v17 = vld [vmem:[#allocation11 + $0x38] sm:$0xff] }
 0x362   :  { %1392 = vmatpush.bf16.msrb.mxu0 %v1817_v17 }
 0x363   :  { %v1073_v19 = vmul.f32 %v1879_v15, %v1072_v18  ;;  %v1825_v18 = vld [vmem:[#allocation11 + $0x78] sm:$0xff] }
 0x364   :  { %1406 = vmatpush.bf16.msra.mxu1 %v1825_v18 }
 0x366   :  { %v759_v20 = vpop.f32.mrf.mxu3 }
 0x367   :  { %v784_v21 = vpack.c.bf16 %v759_v20, %v759_v20  ;;  %v1074_v20 = vadd.f32 %v1879_v15, %v1073_v19 }
 0x369   :  { %v940_v23 = vunpack.c.l.b16 %v784_v21 }
 0x36b   :  { %v942_v24 = vpack.c.b16 %v940_v23, %v940_v23 }
 0x36d   :  { %944 = vrot.lane.b32.xlu2 %v942_v24, %s2070_s29 }
 0x36e   :  { %v638_v25 = vpop.f32.mrf.mxu0  ;;  %v761_v26 = vpop.f32.mrf.mxu3 }
 0x36f   :  { %v643_v27 = vpack.c.bf16 %v638_v25, %v638_v25 }
 0x371   :  { %v931_v41 = vunpack.c.l.b16 %v643_v27 }
 0x373   :  { %v933_v28 = vpack.c.b16 %v931_v41, %v931_v41 }
 0x375   :  { %936 = vrot.lane.b32.xlu1 %v933_v28, %s2079_s9  ;;  %v1692_v28 = vld [vmem:[#allocation10 + $0x70] sm:$0xf] }
 0x376   :  { %v640_v29 = vpop.f32.mrf.mxu0  ;;  %v901_v30 = vpop.f32.mrf.mxu3 }
 0x377   :  { %v926_v32 = vpack.c.bf16 %v901_v30, %v901_v30  ;;  %v1809_v29 = vld [vmem:[#allocation10 + $0x74] sm:$0xf0]  ;;  %v1808_v30 = vld [vmem:[#allocation10 + $0x74] sm:$0xf] }
 0x379   :  { %v950_v34 = vunpack.c.l.b16 %v926_v32  ;;  %v1693_v32 = vor.u32 %v1809_v29, %v1692_v28  ;;  %v1823_v28 = vld [vmem:[#allocation11 + $0x68] sm:$0xff] }
 0x37b   :  { %v952_v57 = vpack.c.b16 %v950_v34, %v950_v34  ;;  %v1694_v34 = vld [vmem:[#allocation10 + $0x78] sm:$0xf0]  ;;  %1226 = vmatpush.bf16.msrb.mxu2 %v1693_v32  ;;  %v1814_v32 = vld [vmem:[#allocation11 + $0x20] sm:$0xff] }
 0x37d   :  { %954 = vrot.lane.b32.xlu0 %v952_v57, %s2078_s7  ;;  %v1697_v57 = vor.u32 %v1808_v30, %v1694_v34  ;;  %v1822_v34 = vld [vmem:[#allocation11 + $0x60] sm:$0xff] }
 0x37e   :  { %v780_v35 = vpop.f32.mrf.mxu0  ;;  %v903_v36 = vpop.f32.mrf.mxu3 }
 0x37f   :  { %v785_v37 = vpack.c.bf16 %v780_v35, %v780_v35  ;;  %1240 = vmatpush.bf16.msra.mxu3 %v1697_v57  ;;  %v1684_v35 = vld [vmem:[#allocation10 + $0x60] sm:$0xf]  ;;  %v1807_v36 = vld [vmem:[#allocation10 + $0x64] sm:$0xf0] }
 0x381   :  { %v941_v38 = vunpack.c.l.b16 %v785_v37  ;;  %v1806_v37 = vld [vmem:[#allocation10 + $0x64] sm:$0xf] }
 0x383   :  { %v943_v39 = vpack.c.b16 %v941_v38, %v941_v38  ;;  %v1685_v38 = vor.u32 %v1807_v36, %v1684_v35 }
 0x385   :  { %946 = vrot.lane.b32.xlu1 %v943_v39, %s2070_s29  ;;  %v1686_v39 = vld [vmem:[#allocation10 + $0x68] sm:$0xf0]  ;;  %1227 = vmatpush.bf16.msrb.mxu2 %v1685_v38 }
 0x386   :  { %v782_v33 = vpop.f32.mrf.mxu0 }
 0x387   :  { %v1689_v33 = vor.u32 %v1806_v37, %v1686_v39 }
 0x389   :  { %1241 = vmatpush.bf16.msra.mxu3 %v1689_v33 }
 0x38e   :  { %v922_v42 = vpop.f32.mrf.mxu0 }
 0x38f   :  { %v927_v43 = vpack.c.bf16 %v922_v42, %v922_v42  ;;  %v1676_v42 = vld [vmem:[#allocation10 + $0x50] sm:$0xf] }
 0x391   :  { %v951_v45 = vunpack.c.l.b16 %v927_v43  ;;  %v1805_v43 = vld [vmem:[#allocation10 + $0x54] sm:$0xf0] }
 0x393   :  { %v953_v46 = vpack.c.b16 %v951_v45, %v951_v45  ;;  %v1804_v45 = vld [vmem:[#allocation10 + $0x54] sm:$0xf] }
 0x395   :  { %956 = vrot.lane.b32.xlu2 %v953_v46, %s2078_s7  ;;  %v1677_v46 = vor.u32 %v1805_v43, %v1676_v42 }
 0x396   :  { %v924_v49 = vpop.f32.mrf.mxu0 }
 0x397   :  { %v1678_v49 = vld [vmem:[#allocation10 + $0x58] sm:$0xf0]  ;;  %1228 = vmatpush.bf16.msrb.mxu2 %v1677_v46 }
 0x398   :  { %v1681_v44 = vor.u32 %v1804_v45, %v1678_v49  ;;  %v2346_v45 = vld [vmem:[%s2383_s5] ss:$0 sm:$0xff] }
 0x39a   :  { %1242 = vmatpush.bf16.msra.mxu3 %v1681_v44 }
 0x39b   :  { %1229 = vmatpush.bf16.msrb.mxu2 %v1669_v54 }
 0x39e   :  { %1243 = vmatpush.bf16.msra.mxu3 %v1673_v58  ;;  %v1813_v58 = vld [vmem:[#allocation11 + $0x18] sm:$0xff] }
 0x3b7   :  { %v935_v60 = vpop.permute.xlu2 %934 }
 0x3b8   :  { %v960_v0 = vsel %vm351_vm0, %v482_v62, %v935_v60  ;;  %v1801_v60 = vld [vmem:[#allocation10 + $0x34] sm:$0xf0]  ;;  %v1662_v62 = vld [vmem:[#allocation10 + $0x38] sm:$0xf0] }
 0x3c7   :  { %v945_v16 = vpop.permute.xlu2 %944 }
 0x3c8   :  { %v966_v1 = vsel %vm964_vm1, %v960_v0, %v945_v16  ;;  %v1661_v16 = vor.u32 %v1801_v60, %v1660_v59  ;;  %v1799_v0 = vld [vmem:[#allocation10 + $0x24] sm:$0xf0]  ;;  %v1821_v59 = vld [vmem:[#allocation11 + $0x58] sm:$0xff]  ;;  %v1820_v60 = vld [vmem:[#allocation11 + $0x50] sm:$0xff] }
 0x3ca   :  { %1230 = vmatpush.bf16.msrb.mxu2 %v1661_v16  ;;  %v1819_v16 = vld [vmem:[#allocation11 + $0x48] sm:$0xff] }
 0x3e7   :  { %v937_v61 = vpop.permute.xlu1 %936 }
 0x3e8   :  { %v963_v2 = vsel %vm351_vm0, %v483_v63, %v937_v61  ;;  %vm1075_vm0 = vweird.f32 %v1879_v15  ;;  %v1800_v61 = vld [vmem:[#allocation10 + $0x34] sm:$0xf]  ;;  %v1652_v63 = vld [vmem:[#allocation10 + $0x20] sm:$0xf] }
 0x3e9   :  { %v2328_v21 = vsel %vm1075_vm0, %v1879_v15, %v1074_v20 }
 0x3ef   :  { %v955_v8 = vpop.permute.xlu0 %954  ;;  %v957_v5 = vpop.permute.xlu2 %956 }
 0x3f0   :  { %v971_v3 = vsel %vm969_vm2, %v966_v1, %v955_v8  ;;  %v1665_v8 = vor.u32 %v1800_v61, %v1662_v62  ;;  %v1798_v1 = vld [vmem:[#allocation10 + $0x24] sm:$0xf]  ;;  %v1811_v61 = vld [vmem:[#allocation11 + $0x8] sm:$0xff] }
 0x3f1   :  { %v996_v9 = vunpack.c.l.b16 %v971_v3  ;;  %v1654_v3 = vld [vmem:[#allocation10 + $0x28] sm:$0xf0]  ;;  %v1810_v62 = vld [vmem:[#allocation11] sm:$0xff] }
 0x3f2   :  { %1244 = vmatpush.bf16.msra.mxu3 %v1665_v8  ;;  %v1818_v8 = vld [vmem:[#allocation11 + $0x40] sm:$0xff] }
 0x3f7   :  { %v947_v4 = vpop.permute.xlu1 %946 }
 0x3f8   :  { %v968_v6 = vsel %vm964_vm1, %v963_v2, %v947_v4  ;;  %v1653_v2 = vor.u32 %v1799_v0, %v1652_v63  ;;  %v1657_v4 = vor.u32 %v1798_v1, %v1654_v3  ;;  %v1140_v63 = vld [vmem:[%s2386_s8] sm:$0x3] }
 0x3f9   :  { %v973_v7 = vsel %vm969_vm2, %v968_v6, %v957_v5  ;;  %v1644_v5 = vld [vmem:[#allocation10 + $0x10] sm:$0xf]  ;;  %v1797_v6 = vld [vmem:[#allocation10 + $0x14] sm:$0xf0]  ;;  %v1143_v3 = vperm.slane %v1140_v63, 1 }
 0x3fa   :  { %v997_v10 = vunpack.c.l.b16 %v973_v7  ;;  %1231 = vmatpush.bf16.msrb.mxu2 %v1653_v2  ;;  %1245 = vmatpush.bf16.msra.mxu3 %v1657_v4  ;;  %v1796_v7 = vld [vmem:[#allocation10 + $0x14] sm:$0xf]  ;;  %v1142_v2 = vperm.slane %v1140_v63, 0 }
 0x3fc   :  { %v998_v11 = vpack.c.b16 %v997_v10, %v996_v9  ;;  %v1645_v9 = vor.u32 %v1797_v6, %v1644_v5  ;;  %v1646_v10 = vld [vmem:[#allocation10 + $0x18] sm:$0xf0] }
 0x3fe   :  { %1056 = vmatmul.bf16.vlgmr.msrb.gmra.mxu1 %v998_v11  ;;  %v1636_v11 = vld [vmem:[#allocation10] sm:$0xf]  ;;  %1232 = vmatpush.bf16.msrb.mxu2 %v1645_v9 }
 0x47b   :  { %v1057_v55 = vpop.f32.mrf.mxu1 }
 0x47c   :  { %v1058_v52 = vadd.f32 %v1842_v22, %v1057_v55 }
 0x47e   :  { %v1064_v12 = vadd.f32 %v1058_v52, %v2172_v47  ;;  %v1649_v52 = vor.u32 %v1796_v7, %v1646_v10 }
 0x480   :  { %1066 = vadd.xlane.f32.xlu1 %v1064_v12  ;;  %1246 = vmatpush.bf16.msra.mxu3 %v1649_v52 }
 0x483   :  { %v1059_v31 = vpop.f32.mrf.mxu1 }
 0x484   :  { %v1060_v13 = vadd.f32 %v1842_v22, %v1059_v31  ;;  %v1795_v22 = vld [vmem:[#allocation10 + $0x4] sm:$0xf0]  ;;  %v1638_v31 = vld [vmem:[#allocation10 + $0x8] sm:$0xf0] }
 0x486   :  { %v1065_v51 = vadd.f32 %v1060_v13, %v2174_v48 }
 0x488   :  { %1068 = vadd.xlane.f32.xlu2 %v1065_v51 }
 0x4f3   :  { %v1067_v23 = vpop.xlane.xlu1 %1066 }
 0x4f4   :  { %v1077_v24 = vmul.f32 %v2328_v21, %v1067_v23  ;;  %v1816_v23 = vld [vmem:[#allocation11 + $0x30] sm:$0xff] }
 0x4f5   :  { %1393 = vmatpush.bf16.msrb.mxu0 %v1816_v23 }
 0x4f6   :  { %v2331_v47 = vsub.f32 %v1064_v12, %v1077_v24  ;;  %v1794_v12 = vld [vmem:[#allocation10 + $0x4] sm:$0xf]  ;;  %v1824_v24 = vld [vmem:[#allocation11 + $0x70] sm:$0xff] }
 0x4f7   :  { %v1641_v14 = vor.u32 %v1794_v12, %v1638_v31  ;;  %1407 = vmatpush.bf16.msra.mxu1 %v1824_v24 }
 0x4f8   :  { %v1081_v25 = vmul.f32 %v2331_v47, %v2331_v47 }
 0x4f9   :  { %1247 = vmatpush.bf16.msra.mxu3 %v1641_v14 }
 0x4fa   :  { %1083 = vadd.xlane.f32.xlu0 %v1081_v25 }
 0x4fb   :  { %v1069_v48 = vpop.xlane.xlu2 %1068  ;;  %1408 = vmatpush.bf16.msra.mxu1 %v1823_v28 }
 0x4fc   :  { %v1078_v26 = vmul.f32 %v2328_v21, %v1069_v48 }
 0x4fe   :  { %v2336_v27 = vsub.f32 %v1065_v51, %v1078_v26  ;;  %v1637_v51 = vor.u32 %v1795_v22, %v1636_v11 }
 0x4ff   :  { %1409 = vmatpush.bf16.msra.mxu1 %v1822_v34 }
 0x500   :  { %v1082_v41 = vmul.f32 %v2336_v27, %v2336_v27  ;;  %1233 = vmatpush.bf16.msrb.mxu2 %v1637_v51 }
 0x502   :  { %1085 = vadd.xlane.f32.xlu1 %v1082_v41  ;;  %v1815_v41 = vld [vmem:[#allocation11 + $0x28] sm:$0xff] }
 0x503   :  { %1394 = vmatpush.bf16.msrb.mxu0 %v1815_v41  ;;  %1410 = vmatpush.bf16.msra.mxu1 %v1821_v59 }
 0x507   :  { %1395 = vmatpush.bf16.msrb.mxu0 %v1814_v32  ;;  %1411 = vmatpush.bf16.msra.mxu1 %v1820_v60 }
 0x50b   :  { %1396 = vmatpush.bf16.msrb.mxu0 %v1813_v58  ;;  %1412 = vmatpush.bf16.msra.mxu1 %v1819_v16 }
 0x50f   :  { %1413 = vmatpush.bf16.msra.mxu1 %v1818_v8 }
 0x56d   :  { %v1084_v55 = vpop.xlane.xlu0 %1083 }
 0x56e   :  { %v1087_v13 = vmul.f32 %v1084_v55, %v2328_v21 }
 0x570   :  { %v1089_v15 = vadd.f32 1e-06, %v1087_v13  ;;  %v1845_v13 = vld [vmem:[%s2388_s10] ss:$0 sm:$0xff]  ;;  %s2081_s10 = smov [#allocation13]  }
 0x571   :  { %s1472_s15 = sshll.u32 %s2081_s10, 4  ;;  %s1473_s15 = int_to_ptr.vmem [resolvable:$true] %s1472_s15 }
 0x572   :  { %1880 = vrsqrt.f32 %v1089_v15  ;;  %vm1097_vm10 = vweird.f32 %v1089_v15 }
 0x575   :  { %v1086_v19 = vpop.xlane.xlu1 %1085 }
 0x576   :  { %v1088_v20 = vmul.f32 %v1086_v19, %v2328_v21 }
 0x578   :  { %v1881_v25 = vpop.eup %1880  ;;  %v1090_v48 = vadd.f32 1e-06, %v1088_v20 }
 0x579   :  { %v1092_v26 = vmul.f32 %v1881_v25, %v1089_v15  ;;  %vm1098_vm9 = vweird.f32 %v1881_v25 }
 0x57a   :  { %1882 = vrsqrt.f32 %v1090_v48  ;;  %vm1099_vm11 = vmor %vm1097_vm10, %vm1098_vm9  ;;  %vm1107_vm13 = vweird.f32 %v1090_v48 }
 0x57b   :  { %v1093_v29 = vmul.f32 %v1881_v25, %v1092_v26 }
 0x57d   :  { %v1094_v30 = vmul.f32 0.5, %v1093_v29 }
 0x57f   :  { %v1095_v57 = vsub.f32 1.5, %v1094_v30 }
 0x580   :  { %v1883_v35 = vpop.eup %1882 }
 0x581   :  { %v1096_v36 = vmul.f32 %v1881_v25, %v1095_v57  ;;  %v1102_v37 = vmul.f32 %v1883_v35, %v1090_v48  ;;  %vm1108_vm12 = vweird.f32 %v1883_v35 }
 0x582   :  { %vm1109_vm14 = vmor %vm1107_vm13, %vm1108_vm12 }
 0x583   :  { %v1103_v38 = vmul.f32 %v1883_v35, %v1102_v37  ;;  %v1100_v39 = vsel %vm1099_vm11, %v1881_v25, %v1096_v36 }
 0x584   :  { %v1111_v43 = vmul.f32 %v1100_v39, %v2331_v47 }
 0x585   :  { %v1104_v33 = vmul.f32 0.5, %v1103_v38 }
 0x586   :  { %v1116_v50 = vmul.f32 %v2346_v45, %v1111_v43 }
 0x587   :  { %v1105_v42 = vsub.f32 1.5, %v1104_v33 }
 0x588   :  { %v1121_v53 = vadd.f32 %v2353_v40, %v1116_v50 }
 0x589   :  { %v1106_v46 = vmul.f32 %v1883_v35, %v1105_v42 }
 0x58b   :  { %v1110_v49 = vsel %vm1109_vm14, %v1883_v35, %v1106_v46 }
 0x58c   :  { %v1112_v44 = vmul.f32 %v1110_v49, %v2336_v27  ;;  %v1812_v27 = vld [vmem:[#allocation11 + $0x10] sm:$0xff] }
 0x58d   :  { %1397 = vmatpush.bf16.msrb.mxu0 %v1812_v27 }
 0x58e   :  { %v1117_v47 = vmul.f32 %v2346_v45, %v1112_v44 }
 0x590   :  { %v1122_v54 = vadd.f32 %v2353_v40, %v1117_v47 }
 0x591   :  { %1398 = vmatpush.bf16.msrb.mxu0 %v1811_v61 }
 0x592   :  { %v1123_v56 = vpack.c.bf16 %v1122_v54, %v1121_v53 }
 0x594   :  { %1234 = vmatmul.bf16.vlgmr.msrb.gmra.mxu2 %v1123_v56  ;;  %1248 = vmatmul.bf16.vlgmr.msra.gmra.mxu3 %v1123_v56 }
 0x595   :  { %1399 = vmatpush.bf16.msrb.mxu0 %v1810_v62 }
 0x617   :  { %v1235_v0 = vpop.f32.mrf.mxu2  ;;  %v1249_v1 = vpop.f32.mrf.mxu3 }
 0x618   :  { %v1236_v4 = vadd.f32 %v1235_v0, %v1142_v2  ;;  %v1250_v5 = vadd.f32 %v1249_v1, %v1143_v3 }
 0x61a   :  { %v1254_v11 = vmax.f32 %v1236_v4, 0.0  ;;  %v1255_v22 = vmax.f32 %v1250_v5, 0.0 }
 0x61f   :  { %v1237_v6 = vpop.f32.mrf.mxu2  ;;  %v1251_v7 = vpop.f32.mrf.mxu3 }
 0x620   :  { %v1238_v9 = vadd.f32 %v1237_v6, %v1142_v2  ;;  %v1252_v10 = vadd.f32 %v1251_v7, %v1143_v3 }
 0x622   :  { %v1256_v55 = vmax.f32 %v1238_v9, 0.0  ;;  %v1257_v52 = vmax.f32 %v1252_v10, 0.0 }
 0x624   :  { %v1258_v12 = vpack.c.bf16 %v1256_v55, %v1254_v11  ;;  %v1259_v31 = vpack.c.bf16 %v1257_v52, %v1255_v22 }
 0x626   :  { %1400 = vmatmul.bf16.vlgmr.msrb.gmra.mxu0 %v1258_v12  ;;  %1414 = vmatmul.bf16.vlgmr.msra.gmra.mxu1 %v1259_v31 }
 0x6a3   :  { %v1401_v51 = vpop.f32.mrf.mxu0  ;;  %v1415_v14 = vpop.f32.mrf.mxu1 }
 0x6a4   :  { %v1402_v15 = vadd.f32 %v1845_v13, %v1401_v51 }
 0x6a6   :  { %v1416_v17 = vadd.f32 %v1415_v14, %v1402_v15 }
 0x6a8   :  { %v1420_v18 = vadd.f32 %v1416_v17, %v1121_v53 }
 0x6aa   :  { %1422 = vadd.xlane.f32.xlu2 %v1420_v18 }
 0x6ab   :  { %v1403_v19 = vpop.f32.mrf.mxu0  ;;  %v1417_v23 = vpop.f32.mrf.mxu1 }
 0x6ac   :  { %v1404_v20 = vadd.f32 %v1845_v13, %v1403_v19 }
 0x6ae   :  { %v1418_v24 = vadd.f32 %v1417_v23, %v1404_v20 }
 0x6b0   :  { %v1421_v25 = vadd.f32 %v1418_v24, %v1122_v54 }
 0x6b2   :  { %1424 = vadd.xlane.f32.xlu1 %v1421_v25 }
 0x71d   :  { %v1423_v48 = vpop.xlane.xlu2 %1422 }
 0x71e   :  { %v1426_v26 = vmul.f32 %v1423_v48, %v2328_v21 }
 0x720   :  { %v1428_v41 = vsub.f32 %v1420_v18, %v1426_v26 }
 0x722   :  { %v1430_v28 = vmul.f32 %v1428_v41, %v1428_v41 }
 0x724   :  { %1432 = vadd.xlane.f32.xlu2 %v1430_v28 }
 0x725   :  { %v1425_v29 = vpop.xlane.xlu1 %1424 }
 0x726   :  { %v1427_v30 = vmul.f32 %v1425_v29, %v2328_v21 }
 0x728   :  { %v1429_v32 = vsub.f32 %v1421_v25, %v1427_v30 }
 0x72a   :  { %v1431_v34 = vmul.f32 %v1429_v32, %v1429_v32 }
 0x72c   :  { %1434 = vadd.xlane.f32.xlu1 %v1431_v34 }
 0x797   :  { %v1433_v57 = vpop.xlane.xlu2 %1432 }
 0x798   :  { %v1436_v35 = vmul.f32 %v1433_v57, %v2328_v21 }
 0x79a   :  { %v1438_v36 = vadd.f32 1e-06, %v1436_v35 }
 0x79c   :  { %1884 = vrsqrt.f32 %v1438_v36  ;;  %vm1446_vm3 = vweird.f32 %v1438_v36 }
 0x79f   :  { %v1435_v37 = vpop.xlane.xlu1 %1434 }
 0x7a0   :  { %v1437_v38 = vmul.f32 %v1435_v37, %v2328_v21 }
 0x7a2   :  { %v1885_v39 = vpop.eup %1884  ;;  %v1439_v33 = vadd.f32 1e-06, %v1437_v38 }
 0x7a3   :  { %v1441_v42 = vmul.f32 %v1885_v39, %v1438_v36  ;;  %vm1447_vm15 = vweird.f32 %v1885_v39 }
 0x7a4   :  { %1886 = vrsqrt.f32 %v1439_v33  ;;  %vm1448_vm4 = vmor %vm1446_vm3, %vm1447_vm15  ;;  %vm1456_vm6 = vweird.f32 %v1439_v33 }
 0x7a5   :  { %v1442_v43 = vmul.f32 %v1885_v39, %v1441_v42 }
 0x7a7   :  { %v1443_v46 = vmul.f32 0.5, %v1442_v43 }
 0x7a9   :  { %v1444_v49 = vsub.f32 1.5, %v1443_v46 }
 0x7aa   :  { %v1887_v44 = vpop.eup %1886 }
 0x7ab   :  { %v1445_v50 = vmul.f32 %v1885_v39, %v1444_v49  ;;  %v1451_v47 = vmul.f32 %v1887_v44, %v1439_v33  ;;  %vm1457_vm5 = vweird.f32 %v1887_v44 }
 0x7ac   :  { %vm1458_vm7 = vmor %vm1456_vm6, %vm1457_vm5 }
 0x7ad   :  { %v1449_v53 = vsel %vm1448_vm4, %v1885_v39, %v1445_v50  ;;  %v1452_v54 = vmul.f32 %v1887_v44, %v1451_v47 }
 0x7ae   :  { %v1460_v56 = vmul.f32 %v1449_v53, %v1428_v41 }
 0x7af   :  { %v1453_v58 = vmul.f32 0.5, %v1452_v54 }
 0x7b0   :  { %v1462_v59 = vmul.f32 %v2346_v45, %v1460_v56 }
 0x7b1   :  { %v1454_v21 = vsub.f32 1.5, %v1453_v58 }
 0x7b2   :  { %v1464_v27 = vadd.f32 %v2353_v40, %v1462_v59 }
 0x7b3   :  { %v1455_v60 = vmul.f32 %v1887_v44, %v1454_v21 }
 0x7b4   :  { %1466 = vst [vmem:[#allocation13] sm:$0xff] %v1464_v27 }
 0x7b5   :  { %v1459_v61 = vsel %vm1458_vm7, %v1887_v44, %v1455_v60 }
 0x7b6   :  { %v1461_v16 = vmul.f32 %v1459_v61, %v1429_v32 }
 0x7b8   :  { %v1463_v62 = vmul.f32 %v2346_v45, %v1461_v16 }
 0x7ba   :  { %v1465_v8 = vadd.f32 %v2353_v40, %v1463_v62 }
 0x7bc   :  { %1467 = vst [vmem:[#allocation13 + $0x8] sm:$0xff] %v1465_v8 }
 0x7bd   :  { %1480 = dma.vmem_to_hbm [thread:$0]  %s1473_s15, 256, %s1475_s20, [#allocation4], %s2073_s18, %s2073_s18, %s2074_s19  }
 0x7be   :  { %2064 = dma.done.wait [#allocation4], 256  }
 0x7bf   :  { %2065 = vsyncadd [#allocation4], 4294967040 }
 0x7c0   :  { %1485 = vsyncpa [#allocation3], 1 }
 0x7c1   :  { %1486 = vsyncpa [#allocation6], 1 }
 0x7c2   :  { %1487 = vsyncpa [#allocation9], 1 }
 0x7c3   :  { %1488 = vsyncpa [#allocation12], 1 }
 0x7c4   :  { %1489 = vsyncpa [#allocation4], 1 }

</bundles_post_ra>
